<compile_context>
chip_gen: v7x
topology: tpu7x:2x2x1
jax: 0.10.0
libtpu: 0.0.40
codegen_flags: <defaults>
</compile_context>

<pallas_src>
import functools
import math
from dataclasses import dataclass

import numpy as np
import jax
import jax.numpy as jnp
from jax.experimental import pallas as pl
from jax.experimental.pallas import tpu as pltpu


_SEQ = pltpu.CompilerParams(dimension_semantics=("arbitrary",))
_PAR = pltpu.CompilerParams(dimension_semantics=("parallel",))


# ----------------------------------------------------------------------------
# helpers (glue, plain JAX / numpy)
# ----------------------------------------------------------------------------
def _bilinear_matrix(out_size: int, in_size: int) -> np.ndarray:
    """Row-interpolation matrix for F.interpolate(mode='bilinear', align_corners=False)."""
    w = np.zeros((out_size, in_size), dtype=np.float32)
    if in_size == 1:
        w[:, 0] = 1.0
        return w
    scale = in_size / out_size
    for o in range(out_size):
        src = (o + 0.5) * scale - 0.5
        i0 = int(np.floor(src))
        frac = src - i0
        i0c = min(max(i0, 0), in_size - 1)
        i1c = min(max(i0 + 1, 0), in_size - 1)
        w[o, i0c] += 1.0 - frac
        w[o, i1c] += frac
    return w


def get_schedule(num_steps: int, image_seq_len: int, shift: bool = True):
    """Flux timestep schedule (scalar math, plain numpy)."""
    timesteps = np.linspace(1.0, 0.0, num_steps + 1)
    if shift:
        x1, y1, x2, y2 = 256.0, 0.5, 4096.0, 1.15
        m = (y2 - y1) / (x2 - x1)
        b = y1 - m * x1
        mu = m * image_seq_len + b
        with np.errstate(divide="ignore"):
            timesteps = math.exp(mu) / (math.exp(mu) + (1.0 / timesteps - 1.0))
    return [float(t) for t in timesteps]


def patchify_patch4(mask_hw: jax.Array) -> jax.Array:
    """rearrange '(h ph) (w pw) -> (h w) (ph pw)' (glue reshape).  (L, 4) in {0,1}."""
    h, w = mask_hw.shape
    th, tw = h // 2, w // 2
    return mask_hw.reshape(th, 2, tw, 2).transpose(0, 2, 1, 3).reshape(th * tw, 4)


def unpack(x: jax.Array, height: int, width: int) -> jax.Array:
    """rearrange 'b (h w) (c ph pw) -> b c (h ph) (w pw)' (glue reshape/transpose)."""
    b = x.shape[0]
    th, tw = math.ceil(height / 16), math.ceil(width / 16)
    x = x.reshape(b, th, tw, 16, 2, 2)
    x = jnp.transpose(x, (0, 3, 1, 4, 2, 5))
    return x.reshape(b, 16, th * 2, tw * 2)


def _choose_row_block(n: int) -> int:
    """Pick a row-block size that divides n (preferred) or 512 with ragged tail."""
    for cand in (512, 256, 128, 64, 32):
        if n % cand == 0:
            return cand
    return 512 if n > 512 else n


# ----------------------------------------------------------------------------
# Pallas kernels
# ----------------------------------------------------------------------------
def _interp_threshold_kernel(a_ref, m_ref, bt_ref, o_ref):
    # bilinear resize expressed as A @ M @ B^T (MXU), then mask[mask > 0] = 1
    tmp = jnp.dot(a_ref[...], m_ref[...], preferred_element_type=jnp.float32)
    y = jnp.dot(tmp, bt_ref[...], preferred_element_type=jnp.float32)
    o_ref[...] = jnp.where(y > 0.0, 1.0, y)


def _attn_mask_kernel(col_ref, row_ref, attn_ref, *, text_len, block_rows):
    # Token classes: text (pos < text_len), masked image token, background image token.
    # Allowed attention (matches create_attention_mask):
    #   text_i -> everything ; mask_i -> {text, mask} ; bg_i -> {text, bg}
    # Predicates kept 1-D: (block_rows, 1) for rows, (1, S) for columns; only the final
    # combined boolean expression is full-tile.
    i = pl.program_id(0)
    S = row_ref.shape[1]
    row_pos = i * block_rows + jax.lax.broadcasted_iota(jnp.int32, (block_rows, 1), 0)
    col_pos = jax.lax.broadcasted_iota(jnp.int32, (1, S), 1)

    masked_i = col_ref[...] > 0.5          # (block_rows, 1)
    masked_j = row_ref[...] > 0.5          # (1, S)
    text_i = row_pos < text_len            # (block_rows, 1)
    text_j = col_pos < text_len            # (1, S)
    mask_i = (~text_i) & masked_i
    mask_j = (~text_j) & masked_j
    bg_i = (~text_i) & (~masked_i)
    bg_j = (~text_j) & (~masked_j)

    allow = text_i | (mask_i & (text_j | mask_j)) | (bg_i & (text_j | bg_j))
    # int8 output (nonzero == attend allowed): 4x less HBM writeback than int32.
    attn_ref[...] = jnp.where(allow, jnp.int32(1), jnp.int32(0)).astype(jnp.int8)


def _attn_scale_kernel(row_ref, scale_ref, *, text_len, scale):
    # attention scale: nonzero only at background image tokens (create_attention_scale)
    S = row_ref.shape[1]
    col_pos = jax.lax.broadcasted_iota(jnp.int32, (1, S), 1)
    text_j = col_pos < text_len
    masked_j = row_ref[...] > 0.5
    bg_j = (~text_j) & (~masked_j)
    scale_ref[...] = jnp.where(bg_j, jnp.float32(scale), jnp.float32(0.0))


def _blend_kernel(z_ref, x_ref, m_ref, o_ref):
    # z0[:, masked] = z0*(1-m) + x*m with m in {0,1}  <=>  select(m>0, x, z0).
    m = m_ref[...].astype(jnp.int32) > 0
    o_ref[...] = jnp.where(m, x_ref[...], z_ref[...]).astype(o_ref.dtype)


# ----------------------------------------------------------------------------
# Pallas wrappers
# ----------------------------------------------------------------------------
def interp_and_threshold(mask_hw: jax.Array, h: int, w: int) -> jax.Array:
    H, W = mask_hw.shape
    A = jnp.asarray(_bilinear_matrix(h, H))
    Bt = jnp.asarray(_bilinear_matrix(w, W).T)
    return pl.pallas_call(
        _interp_threshold_kernel,
        grid=(1,),
        in_specs=[pl.BlockSpec((h, H), lambda i: (0, 0)),
                  pl.BlockSpec((H, W), lambda i: (0, 0)),
                  pl.BlockSpec((W, w), lambda i: (0, 0))],
        out_specs=pl.BlockSpec((h, w), lambda i: (0, 0)),
        out_shape=jax.ShapeDtypeStruct((h, w), jnp.float32),
        compiler_params=_SEQ,
    )(A, mask_hw.astype(jnp.float32), Bt)


def attn_mask_tiled(seq_col: jax.Array, seq_row: jax.Array, text_len: int) -> jax.Array:
    """Row-tiled dense (S, S) int8 attention mask (nonzero == attend allowed)."""
    S = seq_row.shape[1]
    block_rows = _choose_row_block(S)
    grid = (pl.cdiv(S, block_rows),)
    kern = functools.partial(_attn_mask_kernel, text_len=int(text_len),
                             block_rows=int(block_rows))
    # TODO(synk): a real flash-attention consumer should take seq_row directly and
    # rebuild allow/scale per (q_tile, k_tile) block instead of reading this O(S^2) mask.
    return pl.pallas_call(
        kern,
        grid=grid,
        in_specs=[pl.BlockSpec((block_rows, 1), lambda i: (i, 0)),
                  pl.BlockSpec((1, S), lambda i: (0, 0))],
        out_specs=pl.BlockSpec((block_rows, S), lambda i: (i, 0)),
        out_shape=jax.ShapeDtypeStruct((S, S), jnp.int8),
        compiler_params=_PAR,
    )(seq_col, seq_row)


def attn_scale_vec(seq_row: jax.Array, text_len: int, scale: float) -> jax.Array:
    S = seq_row.shape[1]
    kern = functools.partial(_attn_scale_kernel, text_len=int(text_len),
                             scale=float(scale))
    return pl.pallas_call(
        kern,
        grid=(1,),
        in_specs=[pl.BlockSpec((1, S), lambda i: (0, 0))],
        out_specs=pl.BlockSpec((1, S), lambda i: (0, 0)),
        out_shape=jax.ShapeDtypeStruct((1, S), jnp.float32),
        compiler_params=_SEQ,
    )(seq_row)


def blend(z0: jax.Array, x: jax.Array, token_mask_i8: jax.Array) -> jax.Array:
    """out = where(mask, x, z0) on a lane-dense view, updating z0 in place."""
    L, D = z0.shape
    n = L * D
    if n % 128 == 0:
        R, C = n // 128, 128      # lane-dense (…, 128) view
    else:
        R, C = L, D
    z2 = z0.reshape(R, C)
    x2 = x.astype(z0.dtype).reshape(R, C)
    m2 = token_mask_i8.reshape(R, C)

    block_r = _choose_row_block(R)
    grid = (pl.cdiv(R, block_r),)
    out = pl.pallas_call(
        _blend_kernel,
        grid=grid,
        in_specs=[pl.BlockSpec((block_r, C), lambda i: (i, 0)) for _ in range(3)],
        out_specs=pl.BlockSpec((block_r, C), lambda i: (i, 0)),
        out_shape=jax.ShapeDtypeStruct((R, C), z0.dtype),
        input_output_aliases={0: 0},
        compiler_params=_PAR,
    )(z2, x2, m2)
    return out.reshape(L, D)


# ----------------------------------------------------------------------------
# Flux_kv_edit forward (inverse -> denoise), JAX/Pallas version
# ----------------------------------------------------------------------------
@dataclass
class Opts:
    height: int
    width: int
    denoise_num_steps: int = 4
    skip_step: int = 0
    attn_mask: bool = True
    attn_scale: float = 1.0
    re_init: bool = False
    inversion_guidance: float = 1.0
    denoise_guidance: float = 3.5


def flux_kv_edit_forward(inp, inp_target, mask, opts: Opts):
    """Returns (unpacked latent image, info dict).  Fully jit-able (no host syncs)."""
    info = {"feature": {}}
    img = inp["img"]                       # (1, L, 64)
    bs, L, d = img.shape
    _, tokens_L, _ = inp["txt"].shape
    h, w = opts.height // 8, opts.width // 8
    S = tokens_L + L

    # -------------------- inverse --------------------
    # F.interpolate(bilinear) + threshold (Pallas, MXU), then cheap glue reshapes.
    mask_hw = interp_and_threshold(mask[0, 0], h, w)             # (h, w) in {0,1}
    patch4 = patchify_patch4(mask_hw)                            # (L, 4)
    token_mask = jnp.tile(patch4, (1, 16))                       # (L, 64), order (c,ph,pw)
    token_mask_i8 = token_mask.astype(jnp.int8)
    # bool_mask = token_mask.sum(-1) > 0.5  (fused into glue; lane-dense row vector)
    tok_row = (jnp.sum(patch4, axis=1) > 0.5).astype(jnp.float32)            # (L,)
    seq_row = jnp.concatenate([jnp.zeros((tokens_L,), jnp.float32), tok_row])[None, :]
    seq_col = seq_row.reshape(S, 1)
    # NOTE: the reference asserts the mask is neither all-false nor all-true; those
    # host-side checks are dropped here to keep the forward jit-able and fully async.

    if opts.attn_mask:
        # (1, S, S) int8, nonzero == attend allowed (boolean semantics, 1/4 the bytes)
        info["attention_mask"] = attn_mask_tiled(seq_col, seq_row, tokens_L)[None]

    denoise_timesteps = get_schedule(opts.denoise_num_steps, L, shift=True)
    denoise_timesteps = denoise_timesteps[opts.skip_step:]

    z0 = img
    info["inverse"] = True
    # TODO(synk): denoise_kv (Flux transformer inversion pass) is not in the module
    # source; identity pass-through stands in for the network here.
    zt = img

    # -------------------- denoise --------------------
    # (the reference recomputes the same interpolated/rearranged mask; reuse it)
    info["mask"] = token_mask[None]
    if opts.re_init:
        noise = jax.random.normal(jax.random.PRNGKey(42), zt.shape, jnp.float32)
        t = denoise_timesteps[0]
        x_full = (z0.astype(jnp.float32) * (1.0 - t) + noise * t).astype(zt.dtype)
    else:
        x_full = zt
    # TODO(synk): denoise_kv (forward denoising pass on the masked tokens) stubbed;
    # x_full plays the role of its output scattered back to the full token sequence.

    if opts.attn_scale != 0:
        # The kernel zeroes text & masked positions, so this equals the reference
        # output whenever the mask is not all-true (which the reference asserts).
        info["attention_scale"] = attn_scale_vec(
            seq_row, tokens_L, opts.attn_scale)[None].astype(jnp.bfloat16)   # (1,1,S)
    else:
        info["attention_scale"] = None
    info["inverse"] = False

    # mask_indices gather/scatter kept dense: rows with an all-zero mask keep z0,
    # which is exactly z0[:, mask_indices] = z0*(1-m) + x*m on the masked rows.
    z_blend = blend(z0[0], x_full[0], token_mask_i8)             # Pallas, lane-dense
    z_img = unpack(z_blend[None].astype(jnp.float32), opts.height, opts.width)
    return z_img, info


# ----------------------------------------------------------------------------
if __name__ == "__main__":
    key = jax.random.PRNGKey(0)
    k1, k2, k3 = jax.random.split(key, 3)

    opts = Opts(height=256, width=256, denoise_num_steps=4, skip_step=0,
                attn_mask=True, attn_scale=1.0, re_init=False)
    h, w = opts.height // 8, opts.width // 8          # 32 x 32 latent
    L = h * w // 4                                    # 256 image tokens
    d = 64                                            # 16 * 2 * 2 packed features
    tokens_L = 64                                     # text tokens -> S = 320 (tiled grid)

    img = jax.random.normal(k1, (1, L, d), jnp.float32).astype(jnp.bfloat16)
    txt = jax.random.normal(k2, (1, tokens_L, 32), jnp.float32).astype(jnp.bfloat16)
    img_t = jax.random.normal(k3, (1, L, d), jnp.float32).astype(jnp.bfloat16)
    inp = {"img": img, "txt": txt}
    inp_target = {"img": img_t, "txt": txt}

    # editing mask, NCHW like PyTorch (neither all-true nor all-false)
    mask = jnp.zeros((1, 1, opts.height, opts.width), jnp.float32)
    mask = mask.at[:, :, 64:192, 64:192].set(1.0)

    # jit end-to-end; return the info arrays too so every Pallas kernel stays live.
    def run(a, b, m):
        z, info = flux_kv_edit_forward(a, b, m, opts)
        return z, info["attention_mask"], info["attention_scale"], info["mask"]

    fwd = jax.jit(run)
    out, attn_m, attn_s, tok_m = jax.block_until_ready(fwd(inp, inp_target, mask))

    S = tokens_L + L
    assert out.shape == (1, 16, h, w) and out.dtype == jnp.float32
    assert attn_m.shape == (1, S, S) and attn_m.dtype == jnp.int8
    assert attn_s.shape == (1, 1, S) and attn_s.dtype == jnp.bfloat16
    assert tok_m.shape == (1, L, d)
    print("KERNEL_OK")
</pallas_src>

<mosaic_0001>
module attributes {stable_mosaic.version = 11 : i64} {
  func.func @_interp_threshold_kernel(%arg0: i32, %arg1: memref<32x256xf32, #tpu.memory_space<vmem>>, %arg2: memref<256x256xf32, #tpu.memory_space<vmem>>, %arg3: memref<256x32xf32, #tpu.memory_space<vmem>>, %arg4: memref<32x32xf32, #tpu.memory_space<vmem>>) attributes {dimension_semantics = [#tpu.dimension_semantics<arbitrary>], iteration_bounds = array<i64: 1>, scalar_prefetch = 0 : i64, scratch_operands = 0 : i64, tpu.core_type = #tpu.core_type<tc>, window_params = [{pipeline_mode = #tpu.pipeline_mode<synchronous>, transform_indices = @transform_0, window_bounds = array<i64: 32, 256>}, {pipeline_mode = #tpu.pipeline_mode<synchronous>, transform_indices = @transform_1, window_bounds = array<i64: 256, 256>}, {pipeline_mode = #tpu.pipeline_mode<synchronous>, transform_indices = @transform_2, window_bounds = array<i64: 256, 32>}, {pipeline_mode = #tpu.pipeline_mode<synchronous>, transform_indices = @transform_3, window_bounds = array<i64: 32, 32>}]} {
    %c0 = arith.constant 0 : index
    %c0_0 = arith.constant 0 : index
    %0 = vector.load %arg1[%c0, %c0_0] : memref<32x256xf32, #tpu.memory_space<vmem>>, vector<32x256xf32>
    %c0_1 = arith.constant 0 : index
    %c0_2 = arith.constant 0 : index
    %1 = vector.load %arg2[%c0_1, %c0_2] : memref<256x256xf32, #tpu.memory_space<vmem>>, vector<256x256xf32>
    %cst = arith.constant dense<0.000000e+00> : vector<32x256xf32>
    %2 = tpu.matmul %0, %1, %cst {dimension_numbers = #tpu.dot_dimension_numbers<[1], [0], [0], [1], [0, 0, 1, 1], [], []>} : vector<32x256xf32>, vector<256x256xf32>, vector<32x256xf32> -> vector<32x256xf32>
    %c0_3 = arith.constant 0 : index
    %c0_4 = arith.constant 0 : index
    %3 = vector.load %arg3[%c0_3, %c0_4] : memref<256x32xf32, #tpu.memory_space<vmem>>, vector<256x32xf32>
    %cst_5 = arith.constant dense<0.000000e+00> : vector<32x32xf32>
    %4 = tpu.matmul %2, %3, %cst_5 {dimension_numbers = #tpu.dot_dimension_numbers<[1], [0], [0], [1], [0, 0, 1, 1], [], []>} : vector<32x256xf32>, vector<256x32xf32>, vector<32x32xf32> -> vector<32x32xf32>
    %cst_6 = arith.constant 0.000000e+00 : f32
    %5 = vector.broadcast %cst_6 : f32 to vector<32x32xf32>
    %6 = arith.cmpf ogt, %4, %5 : vector<32x32xf32>
    %cst_7 = arith.constant 1.000000e+00 : f32
    %7 = vector.broadcast %cst_7 : f32 to vector<32x32xf32>
    %8 = arith.select %6, %7, %4 : vector<32x32xi1>, vector<32x32xf32>
    %c0_8 = arith.constant 0 : index
    %c0_9 = arith.constant 0 : index
    %9 = vector.load %arg4[%c0_8, %c0_9] : memref<32x32xf32, #tpu.memory_space<vmem>>, vector<32x32xf32>
    tpu.vector_store %arg4[%c0_8, %c0_9], %8 {strides = array<i32>} : memref<32x32xf32, #tpu.memory_space<vmem>>, vector<32x32xf32>,
    return
  }
  func.func @transform_0(%arg0: i32) -> (i32, i32) {
    %c0_i32 = arith.constant 0 : i32
    %c0_i32_0 = arith.constant 0 : i32
    %c0_i32_1 = arith.constant 0 : i32
    return %c0_i32, %c0_i32_0 : i32, i32
  }
  func.func @transform_1(%arg0: i32) -> (i32, i32) {
    %c0_i32 = arith.constant 0 : i32
    %c0_i32_0 = arith.constant 0 : i32
    %c0_i32_1 = arith.constant 0 : i32
    return %c0_i32, %c0_i32_0 : i32, i32
  }
  func.func @transform_2(%arg0: i32) -> (i32, i32) {
    %c0_i32 = arith.constant 0 : i32
    %c0_i32_0 = arith.constant 0 : i32
    %c0_i32_1 = arith.constant 0 : i32
    return %c0_i32, %c0_i32_0 : i32, i32
  }
  func.func @transform_3(%arg0: i32) -> (i32, i32) {
    %c0_i32 = arith.constant 0 : i32
    %c0_i32_0 = arith.constant 0 : i32
    %c0_i32_1 = arith.constant 0 : i32
    return %c0_i32, %c0_i32_0 : i32, i32
  }
}

module attributes {stable_mosaic.version = 11 : i64} {
  func.func @_attn_mask_kernel(%arg0: i32, %arg1: memref<64x1xf32, #tpu.memory_space<vmem>>, %arg2: memref<1x320xf32, #tpu.memory_space<vmem>>, %arg3: memref<64x320xi8, #tpu.memory_space<vmem>>) attributes {dimension_semantics = [#tpu.dimension_semantics<parallel>], iteration_bounds = array<i64: 5>, scalar_prefetch = 0 : i64, scratch_operands = 0 : i64, tpu.core_type = #tpu.core_type<tc>, window_params = [{transform_indices = @transform_0, window_bounds = array<i64: 64, 1>}, {pipeline_mode = #tpu.pipeline_mode<synchronous>, transform_indices = @transform_1, window_bounds = array<i64: 1, 320>}, {transform_indices = @transform_2, window_bounds = array<i64: 64, 320>}]} {
    %c64_i32 = arith.constant 64 : i32
    %0 = arith.muli %arg0, %c64_i32 : i32
    %1 = tpu.iota {dimensions = array<i32: 0>} : vector<64x1xi32>
    %2 = vector.broadcast %0 : i32 to vector<64x1xi32>
    %3 = arith.addi %2, %1 : vector<64x1xi32>
    %4 = tpu.iota {dimensions = array<i32: 1>} : vector<1x320xi32>
    %c0 = arith.constant 0 : index
    %c0_0 = arith.constant 0 : index
    %5 = vector.load %arg1[%c0, %c0_0] : memref<64x1xf32, #tpu.memory_space<vmem>>, vector<64x1xf32>
    %cst = arith.constant 5.000000e-01 : f32
    %6 = vector.broadcast %cst : f32 to vector<64x1xf32>
    %7 = arith.cmpf ogt, %5, %6 : vector<64x1xf32>
    %c0_1 = arith.constant 0 : index
    %c0_2 = arith.constant 0 : index
    %8 = vector.load %arg2[%c0_1, %c0_2] : memref<1x320xf32, #tpu.memory_space<vmem>>, vector<1x320xf32>
    %cst_3 = arith.constant 5.000000e-01 : f32
    %9 = vector.broadcast %cst_3 : f32 to vector<1x320xf32>
    %10 = arith.cmpf ogt, %8, %9 : vector<1x320xf32>
    %c64_i32_4 = arith.constant 64 : i32
    %11 = vector.broadcast %c64_i32_4 : i32 to vector<64x1xi32>
    %12 = arith.cmpi slt, %3, %11 : vector<64x1xi32>
    %c64_i32_5 = arith.constant 64 : i32
    %13 = vector.broadcast %c64_i32_5 : i32 to vector<1x320xi32>
    %14 = arith.cmpi slt, %4, %13 : vector<1x320xi32>
    %cst_6 = arith.constant dense<true> : vector<64x1xi1>
    %15 = arith.xori %12, %cst_6 : vector<64x1xi1>
    %16 = arith.andi %15, %7 : vector<64x1xi1>
    %cst_7 = arith.constant dense<true> : vector<1x320xi1>
    %17 = arith.xori %14, %cst_7 : vector<1x320xi1>
    %18 = arith.andi %17, %10 : vector<1x320xi1>
    %cst_8 = arith.constant dense<true> : vector<64x1xi1>
    %19 = arith.xori %12, %cst_8 : vector<64x1xi1>
    %cst_9 = arith.constant dense<true> : vector<64x1xi1>
    %20 = arith.xori %7, %cst_9 : vector<64x1xi1>
    %21 = arith.andi %19, %20 : vector<64x1xi1>
    %cst_10 = arith.constant dense<true> : vector<1x320xi1>
    %22 = arith.xori %14, %cst_10 : vector<1x320xi1>
    %cst_11 = arith.constant dense<true> : vector<1x320xi1>
    %23 = arith.xori %10, %cst_11 : vector<1x320xi1>
    %24 = arith.andi %22, %23 : vector<1x320xi1>
    %25 = arith.ori %14, %18 : vector<1x320xi1>
    %26 = vector.broadcast %16 : vector<64x1xi1> to vector<64x320xi1>
    %27 = vector.broadcast %25 : vector<1x320xi1> to vector<64x320xi1>
    %28 = arith.andi %26, %27 : vector<64x320xi1>
    %29 = vector.broadcast %12 : vector<64x1xi1> to vector<64x320xi1>
    %30 = arith.ori %29, %28 : vector<64x320xi1>
    %31 = arith.ori %14, %24 : vector<1x320xi1>
    %32 = vector.broadcast %21 : vector<64x1xi1> to vector<64x320xi1>
    %33 = vector.broadcast %31 : vector<1x320xi1> to vector<64x320xi1>
    %34 = arith.andi %32, %33 : vector<64x320xi1>
    %35 = arith.ori %30, %34 : vector<64x320xi1>
    %c1_i32 = arith.constant 1 : i32
    %c0_i32 = arith.constant 0 : i32
    %36 = vector.broadcast %c1_i32 : i32 to vector<64x320xi32>
    %37 = vector.broadcast %c0_i32 : i32 to vector<64x320xi32>
    %38 = arith.select %35, %36, %37 : vector<64x320xi1>, vector<64x320xi32>
    %39 = arith.trunci %38 : vector<64x320xi32> to vector<64x320xi8>
    %c0_12 = arith.constant 0 : index
    %c0_13 = arith.constant 0 : index
    %40 = vector.load %arg3[%c0_12, %c0_13] : memref<64x320xi8, #tpu.memory_space<vmem>>, vector<64x320xi8>
    tpu.vector_store %arg3[%c0_12, %c0_13], %39 {strides = array<i32>} : memref<64x320xi8, #tpu.memory_space<vmem>>, vector<64x320xi8>,
    return
  }
  func.func @transform_0(%arg0: i32) -> (i32, i32) {
    %c0_i32 = arith.constant 0 : i32
    %c0_i32_0 = arith.constant 0 : i32
    return %arg0, %c0_i32 : i32, i32
  }
  func.func @transform_1(%arg0: i32) -> (i32, i32) {
    %c0_i32 = arith.constant 0 : i32
    %c0_i32_0 = arith.constant 0 : i32
    %c0_i32_1 = arith.constant 0 : i32
    return %c0_i32, %c0_i32_0 : i32, i32
  }
  func.func @transform_2(%arg0: i32) -> (i32, i32) {
    %c0_i32 = arith.constant 0 : i32
    %c0_i32_0 = arith.constant 0 : i32
    return %arg0, %c0_i32 : i32, i32
  }
}

module attributes {stable_mosaic.version = 11 : i64} {
  func.func @_blend_kernel(%arg0: i32, %arg1: memref<128x128xbf16, #tpu.memory_space<vmem>>, %arg2: memref<128x128xbf16, #tpu.memory_space<vmem>>, %arg3: memref<128x128xi8, #tpu.memory_space<vmem>>, %arg4: memref<128x128xbf16, #tpu.memory_space<vmem>>) attributes {dimension_semantics = [#tpu.dimension_semantics<parallel>], iteration_bounds = array<i64: 1>, scalar_prefetch = 0 : i64, scratch_operands = 0 : i64, tpu.core_type = #tpu.core_type<tc>, window_params = [{transform_indices = @transform_0, window_bounds = array<i64: 128, 128>}, {transform_indices = @transform_1, window_bounds = array<i64: 128, 128>}, {transform_indices = @transform_2, window_bounds = array<i64: 128, 128>}, {transform_indices = @transform_3, window_bounds = array<i64: 128, 128>}]} {
    %c0 = arith.constant 0 : index
    %c0_0 = arith.constant 0 : index
    %0 = vector.load %arg3[%c0, %c0_0] : memref<128x128xi8, #tpu.memory_space<vmem>>, vector<128x128xi8>
    %1 = arith.extsi %0 : vector<128x128xi8> to vector<128x128xi32>
    %c0_i32 = arith.constant 0 : i32
    %2 = vector.broadcast %c0_i32 : i32 to vector<128x128xi32>
    %3 = arith.cmpi sgt, %1, %2 : vector<128x128xi32>
    %c0_1 = arith.constant 0 : index
    %c0_2 = arith.constant 0 : index
    %4 = vector.load %arg2[%c0_1, %c0_2] : memref<128x128xbf16, #tpu.memory_space<vmem>>, vector<128x128xbf16>
    %c0_3 = arith.constant 0 : index
    %c0_4 = arith.constant 0 : index
    %5 = vector.load %arg1[%c0_3, %c0_4] : memref<128x128xbf16, #tpu.memory_space<vmem>>, vector<128x128xbf16>
    %6 = arith.select %3, %4, %5 : vector<128x128xi1>, vector<128x128xbf16>
    %c0_5 = arith.constant 0 : index
    %c0_6 = arith.constant 0 : index
    %7 = vector.load %arg4[%c0_5, %c0_6] : memref<128x128xbf16, #tpu.memory_space<vmem>>, vector<128x128xbf16>
    tpu.vector_store %arg4[%c0_5, %c0_6], %6 {strides = array<i32>} : memref<128x128xbf16, #tpu.memory_space<vmem>>, vector<128x128xbf16>,
    return
  }
  func.func @transform_0(%arg0: i32) -> (i32, i32) {
    %c0_i32 = arith.constant 0 : i32
    %c0_i32_0 = arith.constant 0 : i32
    return %arg0, %c0_i32 : i32, i32
  }
  func.func @transform_1(%arg0: i32) -> (i32, i32) {
    %c0_i32 = arith.constant 0 : i32
    %c0_i32_0 = arith.constant 0 : i32
    return %arg0, %c0_i32 : i32, i32
  }
  func.func @transform_2(%arg0: i32) -> (i32, i32) {
    %c0_i32 = arith.constant 0 : i32
    %c0_i32_0 = arith.constant 0 : i32
    return %arg0, %c0_i32 : i32, i32
  }
  func.func @transform_3(%arg0: i32) -> (i32, i32) {
    %c0_i32 = arith.constant 0 : i32
    %c0_i32_0 = arith.constant 0 : i32
    return %arg0, %c0_i32 : i32, i32
  }
}

module attributes {stable_mosaic.version = 11 : i64} {
  func.func @_attn_scale_kernel(%arg0: i32, %arg1: memref<1x320xf32, #tpu.memory_space<vmem>>, %arg2: memref<1x320xf32, #tpu.memory_space<vmem>>) attributes {dimension_semantics = [#tpu.dimension_semantics<arbitrary>], iteration_bounds = array<i64: 1>, scalar_prefetch = 0 : i64, scratch_operands = 0 : i64, tpu.core_type = #tpu.core_type<tc>, window_params = [{pipeline_mode = #tpu.pipeline_mode<synchronous>, transform_indices = @transform_0, window_bounds = array<i64: 1, 320>}, {pipeline_mode = #tpu.pipeline_mode<synchronous>, transform_indices = @transform_1, window_bounds = array<i64: 1, 320>}]} {
    %0 = tpu.iota {dimensions = array<i32: 1>} : vector<1x320xi32>
    %c64_i32 = arith.constant 64 : i32
    %1 = vector.broadcast %c64_i32 : i32 to vector<1x320xi32>
    %2 = arith.cmpi slt, %0, %1 : vector<1x320xi32>
    %c0 = arith.constant 0 : index
    %c0_0 = arith.constant 0 : index
    %3 = vector.load %arg1[%c0, %c0_0] : memref<1x320xf32, #tpu.memory_space<vmem>>, vector<1x320xf32>
    %cst = arith.constant 5.000000e-01 : f32
    %4 = vector.broadcast %cst : f32 to vector<1x320xf32>
    %5 = arith.cmpf ogt, %3, %4 : vector<1x320xf32>
    %cst_1 = arith.constant dense<true> : vector<1x320xi1>
    %6 = arith.xori %2, %cst_1 : vector<1x320xi1>
    %cst_2 = arith.constant dense<true> : vector<1x320xi1>
    %7 = arith.xori %5, %cst_2 : vector<1x320xi1>
    %8 = arith.andi %6, %7 : vector<1x320xi1>
    %cst_3 = arith.constant 1.000000e+00 : f32
    %cst_4 = arith.constant 0.000000e+00 : f32
    %9 = vector.broadcast %cst_3 : f32 to vector<1x320xf32>
    %10 = vector.broadcast %cst_4 : f32 to vector<1x320xf32>
    %11 = arith.select %8, %9, %10 : vector<1x320xi1>, vector<1x320xf32>
    %c0_5 = arith.constant 0 : index
    %c0_6 = arith.constant 0 : index
    %12 = vector.load %arg2[%c0_5, %c0_6] : memref<1x320xf32, #tpu.memory_space<vmem>>, vector<1x320xf32>
    tpu.vector_store %arg2[%c0_5, %c0_6], %11 {strides = array<i32>} : memref<1x320xf32, #tpu.memory_space<vmem>>, vector<1x320xf32>,
    return
  }
  func.func @transform_0(%arg0: i32) -> (i32, i32) {
    %c0_i32 = arith.constant 0 : i32
    %c0_i32_0 = arith.constant 0 : i32
    %c0_i32_1 = arith.constant 0 : i32
    return %c0_i32, %c0_i32_0 : i32, i32
  }
  func.func @transform_1(%arg0: i32) -> (i32, i32) {
    %c0_i32 = arith.constant 0 : i32
    %c0_i32_0 = arith.constant 0 : i32
    %c0_i32_1 = arith.constant 0 : i32
    return %c0_i32, %c0_i32_0 : i32, i32
  }
}

</mosaic_0001>

<bundles_post_ra>
// kernel: run.4
= control target key start
LH: loop header
LB: loop body
LE: loop exit
PB: predicated region body
PF: predicated region fallthrough
CT: control target
= control target key end

     0   :  { %8 = vsyncpa [#allocation3], 0  ;;  %s655_s0 = inlined_call_operand.hbm [shape: f32[32,256], index: 0, kind: input, shape index: {}]   ;;  %s656_s1 = inlined_call_operand.hbm [shape: f32[256,256], index: 1, kind: input, shape index: {}]   ;;  %s657_s2 = inlined_call_operand.hbm [shape: f32[256,32], index: 2, kind: input, shape index: {}]   ;;  %s658_s3 = inlined_call_operand.vmem [shape: f32[32,32], index: 3, kind: output, shape index: {}]  }
   0x1   :  { %9 = vsyncpa [#allocation5], 0  ;;  %s569_s12 = smov [#allocation4]   ;;  %s570_s14 = smov [#allocation2]  }
   0x2   :  { %s27_s13 = sshll.u32 %s569_s12, 4  ;;  %s15_s15 = sshll.u32 %s570_s14, 4  ;;  %s28_s13 = int_to_ptr.vmem [resolvable:$true] %s27_s13  ;;  %s596_s15 = int_to_ptr.vmem [resolvable:$true] %s15_s15 }
   0x3   :  { %s499_s18 = scalar_lea.hbm %s656_s1, 8192 }
   0x4   :  { %p500_p0 = scmp.ne.s32.totalorder %s656_s1, %s499_s18  ;;  %p503_p1 = scmp.lt.u32.totalorder %s499_s18, %s656_s1 }
   0x6   :  { %p505_p2 = pnand %p503_p1, %p500_p0 }
   0x8   :  { %508 = shalt.err (!%p505_p2)
}
   0x9   :  { %s509_s23 = scalar_lea.vmem %s28_s13, 8192  ;;  %p514_p4 = scmp.lt.s32.totalorder %s28_s13, %s28_s13 }
   0xa   :  { %p510_p3 = scmp.ne.s32.totalorder %s28_s13, %s509_s23  ;;  %p515_p5 = scmp.lt.s32.totalorder %s509_s23, %s509_s23 }
   0xc   :  { %p516_p6 = por %p515_p5, %p514_p4 }
   0xe   :  { %p517_p7 = pnand %p516_p6, %p510_p3 }
  0x10   :  { %520 = shalt.err (!%p517_p7)
}
  0x11   :  { %s571_s24 = smov 256   ;;  %s572_s25 = smov 16  }
  0x12   :  { %33 = dma.hbm_to_vmem [thread:$0]  %s656_s1, 8192, %s28_s13, [#allocation5], %s571_s24, %s571_s24, %s572_s25  }
  0x13   :  { %s521_s30 = scalar_lea.hbm %s655_s0, 1024 }
  0x14   :  { %p522_p8 = scmp.ne.s32.totalorder %s655_s0, %s521_s30  ;;  %p525_p9 = scmp.lt.u32.totalorder %s521_s30, %s655_s0 }
  0x16   :  { %p527_p10 = pnand %p525_p9, %p522_p8 }
  0x18   :  { %530 = shalt.err (!%p527_p10)
}
  0x19   :  { %s531_s8 = scalar_lea.vmem %s596_s15, 1024  ;;  %p536_p12 = scmp.lt.s32.totalorder %s596_s15, %s596_s15 }
  0x1a   :  { %p532_p11 = scmp.ne.s32.totalorder %s596_s15, %s531_s8  ;;  %p537_p13 = scmp.lt.s32.totalorder %s531_s8, %s531_s8 }
  0x1c   :  { %p538_p0 = por %p537_p13, %p536_p12 }
  0x1e   :  { %p539_p1 = pnand %p538_p0, %p532_p11 }
  0x20   :  { %542 = shalt.err (!%p539_p1)
}
  0x21   :  { %21 = dma.hbm_to_vmem [thread:$0]  %s655_s0, 1024, %s596_s15, [#allocation3], %s571_s24, %s571_s24, %s572_s25  }
  0x22   :  { %s573_s10 = smov [#allocation6]   ;;  %s543_s14 = scalar_lea.hbm %s657_s2, 4096 }
  0x23   :  { %s39_s11 = sshll.u32 %s573_s10, 4  ;;  %p544_p2 = scmp.ne.s32.totalorder %s657_s2, %s543_s14  ;;  %s40_s11 = int_to_ptr.vmem [resolvable:$true] %s39_s11 }
  0x24   :  { %p547_p3 = scmp.lt.u32.totalorder %s543_s14, %s657_s2 }
  0x26   :  { %p549_p4 = pnand %p547_p3, %p544_p2 }
  0x28   :  { %552 = shalt.err (!%p549_p4)
}
  0x29   :  { %s553_s20 = scalar_lea.vmem %s40_s11, 4096  ;;  %p558_p6 = scmp.lt.s32.totalorder %s40_s11, %s40_s11 }
  0x2a   :  { %p554_p5 = scmp.ne.s32.totalorder %s40_s11, %s553_s20  ;;  %p559_p7 = scmp.lt.s32.totalorder %s553_s20, %s553_s20 }
  0x2c   :  { %p560_p8 = por %p559_p7, %p558_p6 }
  0x2e   :  { %p561_p9 = pnand %p560_p8, %p554_p5 }
  0x30   :  { %564 = shalt.err (!%p561_p9)
}
  0x31   :  { %s574_s0 = smov 128   ;;  %s575_s15 = smov 8  }
  0x32   :  { %45 = dma.hbm_to_vmem [thread:$0]  %s657_s2, 4096, %s40_s11, [#allocation5], %s574_s0, %s574_s0, %s575_s15  }
  0x33   :  { %565 = dma.done.wait [#allocation3], 1024  }
  0x34   :  { %566 = vsyncadd [#allocation3], 4294966272 }
  0x35   :  { %567 = dma.done.wait [#allocation5], 12288  }
  0x36   :  { %568 = vsyncadd [#allocation5], 4294955008  ;;  %v64_v0 = vld [vmem:[#allocation4 + $0x8] sm:$0xff]  ;;  %v66_v1 = vld [vmem:[#allocation4 + $0x18] sm:$0xff]  ;;  %vm341_vm0 = vcmask 261120  }
  0x37   :  { %v63_v2 = vld [vmem:[#allocation4] sm:$0xff]  ;;  %v396_v3 = vpack.c.bf16 %v66_v1, %v64_v0  ;;  %v65_v4 = vld [vmem:[#allocation4 + $0x10] sm:$0xff]  ;;  %v68_v5 = vld [vmem:[#allocation4 + $0x28] sm:$0xff] }
  0x38   :  { %v70_v6 = vld [vmem:[#allocation4 + $0x38] sm:$0xff]  ;;  %v398_v7 = vpack.c.bf16 %v65_v4, %v63_v2  ;;  %v67_v9 = vld [vmem:[#allocation4 + $0x20] sm:$0xff]  ;;  %v69_v10 = vld [vmem:[#allocation4 + $0x30] sm:$0xff] }
  0x39   :  { %v400_v8 = vpack.c.bf16 %v70_v6, %v68_v5  ;;  %v72_v11 = vld [vmem:[#allocation4 + $0x48] sm:$0xff]  ;;  %397 = vmatprep.subr.bf16.mxu0 %v396_v3  ;;  %v74_v12 = vld [vmem:[#allocation4 + $0x58] sm:$0xff]  ;;  %v402_v13 = vpack.c.bf16 %v69_v10, %v67_v9  ;;  %v71_v15 = vld [vmem:[#allocation4 + $0x40] sm:$0xff] }
  0x3a   :  { %399 = vmatpush1.bf16.msra.mxu0 %v398_v7  ;;  %v404_v14 = vpack.c.bf16 %v74_v12, %v72_v11  ;;  %v73_v16 = vld [vmem:[#allocation4 + $0x50] sm:$0xff]  ;;  %v76_v17 = vld [vmem:[#allocation4 + $0x68] sm:$0xff]  ;;  %v78_v18 = vld [vmem:[#allocation4 + $0x78] sm:$0xff] }
  0x3b   :  { %401 = vmatprep.subr.bf16.mxu0 %v400_v8  ;;  %v406_v19 = vpack.c.bf16 %v73_v16, %v71_v15  ;;  %v408_v20 = vpack.c.bf16 %v78_v18, %v76_v17  ;;  %v75_v21 = vld [vmem:[#allocation4 + $0x60] sm:$0xff]  ;;  %v77_v22 = vld [vmem:[#allocation4 + $0x70] sm:$0xff]  ;;  %v80_v23 = vld [vmem:[#allocation4 + $0x88] sm:$0xff] }
  0x3c   :  { %v82_v24 = vld [vmem:[#allocation4 + $0x98] sm:$0xff]  ;;  %v410_v25 = vpack.c.bf16 %v77_v22, %v75_v21  ;;  %v79_v27 = vld [vmem:[#allocation4 + $0x80] sm:$0xff]  ;;  %v81_v28 = vld [vmem:[#allocation4 + $0x90] sm:$0xff] }
  0x3d   :  { %v412_v26 = vpack.c.bf16 %v82_v24, %v80_v23  ;;  %v84_v29 = vld [vmem:[#allocation4 + $0xa8] sm:$0xff]  ;;  %v86_v30 = vld [vmem:[#allocation4 + $0xb8] sm:$0xff]  ;;  %v414_v31 = vpack.c.bf16 %v81_v28, %v79_v27  ;;  %v83_v33 = vld [vmem:[#allocation4 + $0xa0] sm:$0xff] }
  0x3e   :  { %403 = vmatpush1.bf16.msra.mxu0 %v402_v13  ;;  %v416_v32 = vpack.c.bf16 %v86_v30, %v84_v29  ;;  %v85_v34 = vld [vmem:[#allocation4 + $0xb0] sm:$0xff]  ;;  %v88_v35 = vld [vmem:[#allocation4 + $0xc8] sm:$0xff]  ;;  %v90_v36 = vld [vmem:[#allocation4 + $0xd8] sm:$0xff] }
  0x3f   :  { %405 = vmatprep.subr.bf16.mxu0 %v404_v14  ;;  %v418_v37 = vpack.c.bf16 %v85_v34, %v83_v33  ;;  %v420_v38 = vpack.c.bf16 %v90_v36, %v88_v35  ;;  %v87_v39 = vld [vmem:[#allocation4 + $0xc0] sm:$0xff]  ;;  %v89_v40 = vld [vmem:[#allocation4 + $0xd0] sm:$0xff]  ;;  %v56_v41 = vld [vmem:[#allocation2 + $0x8] sm:$0xff] }
  0x40   :  { %v92_v42 = vld [vmem:[#allocation4 + $0xe8] sm:$0xff]  ;;  %v94_v43 = vld [vmem:[#allocation4 + $0xf8] sm:$0xff]  ;;  %191 = vmatprep.mubr.f32.mxu0 %v56_v41  ;;  %v91_v44 = vld [vmem:[#allocation4 + $0xe0] sm:$0xff]  ;;  %v422_v46 = vpack.c.bf16 %v89_v40, %v87_v39 }
  0x41   :  { %v93_v45 = vld [vmem:[#allocation4 + $0xf0] sm:$0xff]  ;;  %v96_v47 = vld [vmem:[#allocation4 + $0x108] sm:$0xff]  ;;  %v98_v48 = vld [vmem:[#allocation4 + $0x118] sm:$0xff]  ;;  %v424_v52 = vpack.c.bf16 %v94_v43, %v92_v42 }
  0x42   :  { %407 = vmatpush1.bf16.msra.mxu0 %v406_v19  ;;  %v232_v49 = vld [vmem:[#allocation6 + $0x80] sm:$0xff]  ;;  %v233_v50 = vld [vmem:[#allocation6 + $0x88] sm:$0xff]  ;;  %v234_v55 = vld [vmem:[#allocation6 + $0x90] sm:$0xff]  ;;  %v426_v63 = vpack.c.bf16 %v93_v45, %v91_v44  ;;  %v428_v3 = vpack.c.bf16 %v98_v48, %v96_v47 }
  0x43   :  { %409 = vmatprep.subr.bf16.mxu0 %v408_v20  ;;  %v216_v51 = vld [vmem:[#allocation6] sm:$0xff]  ;;  %v460_v53 = vpack.c.bf16 %v233_v50, %v232_v49  ;;  %v217_v54 = vld [vmem:[#allocation6 + $0x8] sm:$0xff]  ;;  %v235_v56 = vld [vmem:[#allocation6 + $0x98] sm:$0xff] }
  0x44   :  { %v462_v57 = vpack.c.bf16 %v217_v54, %v216_v51  ;;  %v464_v58 = vpack.c.bf16 %v235_v56, %v234_v55  ;;  %v218_v59 = vld [vmem:[#allocation6 + $0x10] sm:$0xff]  ;;  %v219_v60 = vld [vmem:[#allocation6 + $0x18] sm:$0xff]  ;;  %v236_v61 = vld [vmem:[#allocation6 + $0xa0] sm:$0xff] }
  0x45   :  { %461 = vmatprep.subr.bf16.mxu1 %v460_v53  ;;  %v237_v62 = vld [vmem:[#allocation6 + $0xa8] sm:$0xff]  ;;  %v95_v0 = vld [vmem:[#allocation4 + $0x100] sm:$0xff]  ;;  %v97_v1 = vld [vmem:[#allocation4 + $0x110] sm:$0xff]  ;;  %v466_v2 = vpack.c.bf16 %v219_v60, %v218_v59 }
  0x46   :  { %411 = vmatpush1.bf16.msra.mxu0 %v410_v25  ;;  %463 = vmatpush3.bf16.msra.mxu1 %v462_v57  ;;  %v100_v4 = vld [vmem:[#allocation4 + $0x128] sm:$0xff]  ;;  %v468_v5 = vpack.c.bf16 %v237_v62, %v236_v61  ;;  %v220_v6 = vld [vmem:[#allocation6 + $0x20] sm:$0xff]  ;;  %v102_v8 = vld [vmem:[#allocation4 + $0x138] sm:$0xff]  ;;  %v430_v11 = vpack.c.bf16 %v97_v1, %v95_v0 }
  0x47   :  { %413 = vmatprep.subr.bf16.mxu0 %v412_v26  ;;  %465 = vmatprep.subr.bf16.mxu1 %v464_v58  ;;  %v221_v7 = vld [vmem:[#allocation6 + $0x28] sm:$0xff]  ;;  %v238_v9 = vld [vmem:[#allocation6 + $0xb0] sm:$0xff]  ;;  %v239_v10 = vld [vmem:[#allocation6 + $0xb8] sm:$0xff]  ;;  %v432_v15 = vpack.c.bf16 %v102_v8, %v100_v4 }
  0x48   :  { %v99_v12 = vld [vmem:[#allocation4 + $0x120] sm:$0xff]  ;;  %v101_v13 = vld [vmem:[#allocation4 + $0x130] sm:$0xff]  ;;  %v470_v14 = vpack.c.bf16 %v221_v7, %v220_v6  ;;  %v104_v16 = vld [vmem:[#allocation4 + $0x148] sm:$0xff]  ;;  %v472_v17 = vpack.c.bf16 %v239_v10, %v238_v9 }
  0x49   :  { %v222_v18 = vld [vmem:[#allocation6 + $0x30] sm:$0xff]  ;;  %v223_v19 = vld [vmem:[#allocation6 + $0x38] sm:$0xff]  ;;  %v240_v21 = vld [vmem:[#allocation6 + $0xc0] sm:$0xff]  ;;  %v434_v23 = vpack.c.bf16 %v101_v13, %v99_v12 }
  0x4a   :  { %415 = vmatpush1.bf16.msra.mxu0 %v414_v31  ;;  %467 = vmatpush3.bf16.msra.mxu1 %v466_v2  ;;  %v106_v20 = vld [vmem:[#allocation4 + $0x158] sm:$0xff]  ;;  %v241_v22 = vld [vmem:[#allocation6 + $0xc8] sm:$0xff]  ;;  %v103_v24 = vld [vmem:[#allocation4 + $0x140] sm:$0xff]  ;;  %v474_v26 = vpack.c.bf16 %v223_v19, %v222_v18 }
  0x4b   :  { %417 = vmatprep.subr.bf16.mxu0 %v416_v32  ;;  %469 = vmatprep.subr.bf16.mxu1 %v468_v5  ;;  %v105_v25 = vld [vmem:[#allocation4 + $0x150] sm:$0xff]  ;;  %v436_v27 = vpack.c.bf16 %v106_v20, %v104_v16  ;;  %v108_v28 = vld [vmem:[#allocation4 + $0x168] sm:$0xff]  ;;  %v476_v29 = vpack.c.bf16 %v241_v22, %v240_v21  ;;  %v224_v30 = vld [vmem:[#allocation6 + $0x40] sm:$0xff] }
  0x4c   :  { %v225_v31 = vld [vmem:[#allocation6 + $0x48] sm:$0xff]  ;;  %v110_v32 = vld [vmem:[#allocation4 + $0x178] sm:$0xff]  ;;  %v242_v33 = vld [vmem:[#allocation6 + $0xd0] sm:$0xff]  ;;  %v438_v35 = vpack.c.bf16 %v105_v25, %v103_v24 }
  0x4d   :  { %v243_v34 = vld [vmem:[#allocation6 + $0xd8] sm:$0xff]  ;;  %v107_v36 = vld [vmem:[#allocation4 + $0x160] sm:$0xff]  ;;  %v440_v39 = vpack.c.bf16 %v110_v32, %v108_v28  ;;  %v112_v40 = vld [vmem:[#allocation4 + $0x188] sm:$0xff] }
  0x4e   :  { %419 = vmatpush1.bf16.msra.mxu0 %v418_v37  ;;  %471 = vmatpush3.bf16.msra.mxu1 %v470_v14  ;;  %v109_v37 = vld [vmem:[#allocation4 + $0x170] sm:$0xff]  ;;  %v480_v41 = vpack.c.bf16 %v243_v34, %v242_v33  ;;  %v227_v43 = vld [vmem:[#allocation6 + $0x58] sm:$0xff]  ;;  %v244_v45 = vld [vmem:[#allocation6 + $0xe0] sm:$0xff] }
  0x4f   :  { %421 = vmatprep.subr.bf16.mxu0 %v420_v38  ;;  %473 = vmatprep.subr.bf16.mxu1 %v472_v17  ;;  %v478_v38 = vpack.c.bf16 %v225_v31, %v224_v30  ;;  %v226_v42 = vld [vmem:[#allocation6 + $0x50] sm:$0xff]  ;;  %v114_v44 = vld [vmem:[#allocation4 + $0x198] sm:$0xff]  ;;  %v442_v47 = vpack.c.bf16 %v109_v37, %v107_v36  ;;  %v111_v48 = vld [vmem:[#allocation4 + $0x180] sm:$0xff] }
  0x50   :  { %v113_v49 = vld [vmem:[#allocation4 + $0x190] sm:$0xff]  ;;  %v482_v50 = vpack.c.bf16 %v227_v43, %v226_v42  ;;  %v444_v51 = vpack.c.bf16 %v114_v44, %v112_v40  ;;  %v228_v54 = vld [vmem:[#allocation6 + $0x60] sm:$0xff]  ;;  %v229_v55 = vld [vmem:[#allocation6 + $0x68] sm:$0xff] }
  0x51   :  { %v118_v56 = vld [vmem:[#allocation4 + $0x1b8] sm:$0xff]  ;;  %v246_v57 = vld [vmem:[#allocation6 + $0xf0] sm:$0xff]  ;;  %v446_v59 = vpack.c.bf16 %v113_v49, %v111_v48  ;;  %v486_v60 = vpack.c.bf16 %v229_v55, %v228_v54  ;;  %v115_v62 = vld [vmem:[#allocation4 + $0x1a0] sm:$0xff] }
  0x52   :  { %423 = vmatpush1.bf16.msra.mxu0 %v422_v46  ;;  %475 = vmatpush3.bf16.msra.mxu1 %v474_v26  ;;  %v245_v46 = vld [vmem:[#allocation6 + $0xe8] sm:$0xff]  ;;  %v247_v58 = vld [vmem:[#allocation6 + $0xf8] sm:$0xff]  ;;  %v119_v5 = vld [vmem:[#allocation4 + $0x1c0] sm:$0xff] }
  0x53   :  { %425 = vmatprep.subr.bf16.mxu0 %v424_v52  ;;  %477 = vmatprep.subr.bf16.mxu1 %v476_v29  ;;  %v116_v52 = vld [vmem:[#allocation4 + $0x1a8] sm:$0xff]  ;;  %v484_v53 = vpack.c.bf16 %v245_v46, %v244_v45  ;;  %v488_v0 = vpack.c.bf16 %v247_v58, %v246_v57  ;;  %v122_v2 = vld [vmem:[#allocation4 + $0x1d8] sm:$0xff]  ;;  %v121_v6 = vld [vmem:[#allocation4 + $0x1d0] sm:$0xff] }
  0x54   :  { %v448_v61 = vpack.c.bf16 %v118_v56, %v116_v52  ;;  %v120_v1 = vld [vmem:[#allocation4 + $0x1c8] sm:$0xff]  ;;  %v126_v8 = vld [vmem:[#allocation4 + $0x1f8] sm:$0xff]  ;;  %v454_v9 = vpack.c.bf16 %v121_v6, %v119_v5  ;;  %v125_v12 = vld [vmem:[#allocation4 + $0x1f0] sm:$0xff] }
  0x55   :  { %v452_v4 = vpack.c.bf16 %v122_v2, %v120_v1  ;;  %v124_v7 = vld [vmem:[#allocation4 + $0x1e8] sm:$0xff]  ;;  %v55_v14 = vld [vmem:[#allocation2] sm:$0xff]  ;;  %v57_v16 = vld [vmem:[#allocation2 + $0x10] sm:$0xff] }
  0x56   :  { %427 = vmatpush1.bf16.msra.mxu0 %v426_v63  ;;  %479 = vmatpush3.bf16.msra.mxu1 %v478_v38  ;;  %v117_v63 = vld [vmem:[#allocation4 + $0x1b0] sm:$0xff]  ;;  %v456_v10 = vpack.c.bf16 %v126_v8, %v124_v7  ;;  %v60_v17 = vld [vmem:[#allocation2 + $0x28] sm:$0xff]  ;;  %v59_v18 = vld [vmem:[#allocation2 + $0x20] sm:$0xff] }
  0x57   :  { %429 = vmatprep.subr.bf16.mxu0 %v428_v3  ;;  %481 = vmatprep.subr.bf16.mxu1 %v480_v41  ;;  %v450_v3 = vpack.c.bf16 %v117_v63, %v115_v62  ;;  %v62_v19 = vld [vmem:[#allocation2 + $0x38] sm:$0xff]  ;;  %v61_v20 = vld [vmem:[#allocation2 + $0x30] sm:$0xff] }
  0x58   :  { %v230_v21 = vld [vmem:[#allocation6 + $0x70] sm:$0xff]  ;;  %v231_v22 = vld [vmem:[#allocation6 + $0x78] sm:$0xff] }
  0x5a   :  { %431 = vmatpush1.bf16.msra.mxu0 %v430_v11  ;;  %483 = vmatpush3.bf16.msra.mxu1 %v482_v50  ;;  %v123_v11 = vld [vmem:[#allocation4 + $0x1e0] sm:$0xff] }
  0x5b   :  { %433 = vmatprep.subr.bf16.mxu0 %v432_v15  ;;  %485 = vmatprep.subr.bf16.mxu1 %v484_v53  ;;  %v458_v13 = vpack.c.bf16 %v125_v12, %v123_v11  ;;  %v58_v15 = vld [vmem:[#allocation2 + $0x18] sm:$0xff] }
  0x5e   :  { %435 = vmatpush1.bf16.msra.mxu0 %v434_v23  ;;  %487 = vmatpush3.bf16.msra.mxu1 %v486_v60  ;;  %v490_v23 = vpack.c.bf16 %v231_v22, %v230_v21 }
  0x5f   :  { %437 = vmatprep.subr.bf16.mxu0 %v436_v27  ;;  %489 = vmatprep.subr.bf16.mxu1 %v488_v0 }
  0x62   :  { %439 = vmatpush1.bf16.msra.mxu0 %v438_v35  ;;  %491 = vmatpush3.bf16.msra.mxu1 %v490_v23 }
  0x63   :  { %441 = vmatprep.subr.bf16.mxu0 %v440_v39 }
  0x66   :  { %443 = vmatpush1.bf16.msra.mxu0 %v442_v47 }
  0x67   :  { %445 = vmatprep.subr.bf16.mxu0 %v444_v51 }
  0x6a   :  { %447 = vmatpush1.bf16.msra.mxu0 %v446_v59 }
  0x6b   :  { %449 = vmatprep.subr.bf16.mxu0 %v448_v61 }
  0x6e   :  { %451 = vmatpush1.bf16.msra.mxu0 %v450_v3 }
  0x6f   :  { %453 = vmatprep.subr.bf16.mxu0 %v452_v4 }
  0x72   :  { %455 = vmatpush1.bf16.msra.mxu0 %v454_v9 }
  0x73   :  { %457 = vmatprep.subr.bf16.mxu0 %v456_v10 }
  0x76   :  { %459 = vmatpush1.bf16.msra.mxu0 %v458_v13 }
  0x79   :  { %192 = vmatmul.mubr.f32.vlgmr.msra.gmra.mrb[0].mxu0 %v55_v14 }
  0x7a   :  { %197 = vmatprep.mubr.f32.mxu0 %v58_v15 }
  0x7d   :  { %198 = vmatmul.mubr.f32.gmra.mrb[2].mxu0 %v57_v16 }
  0x7e   :  { %203 = vmatprep.mubr.f32.mxu0 %v60_v17 }
  0x81   :  { %204 = vmatmul.mubr.f32.gmra.mrb[4].mxu0 %v59_v18 }
  0x82   :  { %209 = vmatprep.mubr.f32.mxu0 %v62_v19 }
  0x85   :  { %210 = vmatmul.mubr.f32.gmra.mrb[6].mxu0 %v61_v20 }
 0x14c   :  { %v193_v24 = vpop.f32.mrb[0].mxu0 }
 0x14d   :  { %v195_v25 = vpop.f32.mrb[1].mxu0 }
 0x14e   :  { %312 = vmatprep.mubr.f32.mxu1 %v195_v25 }
 0x14f   :  { %313 = vmatmul.mubr.f32.vlgmr.msra.gmra.mrb[0].mxu1 %v193_v24 }
 0x150   :  { %v199_v26 = vpop.f32.mrb[2].mxu0 }
 0x151   :  { %v201_v27 = vpop.f32.mrb[3].mxu0 }
 0x152   :  { %317 = vmatprep.mubr.f32.mxu1 %v201_v27 }
 0x153   :  { %318 = vmatmul.mubr.f32.gmra.mrb[2].mxu1 %v199_v26 }
 0x154   :  { %v205_v28 = vpop.f32.mrb[4].mxu0 }
 0x155   :  { %v207_v29 = vpop.f32.mrb[5].mxu0 }
 0x156   :  { %322 = vmatprep.mubr.f32.mxu1 %v207_v29 }
 0x157   :  { %323 = vmatmul.mubr.f32.gmra.mrb[4].mxu1 %v205_v28 }
 0x158   :  { %v211_v30 = vpop.f32.mrb[6].mxu0 }
 0x159   :  { %v213_v31 = vpop.f32.mrb[7].mxu0 }
 0x15a   :  { %327 = vmatprep.mubr.f32.mxu1 %v213_v31 }
 0x15b   :  { %328 = vmatmul.mubr.f32.gmra.mrb[6].mxu1 %v211_v30 }
 0x222   :  { %v384_v32 = vpop.f32.mrb[0].mxu1 }
 0x223   :  { %v385_v33 = vpop.f32.mrb[1].mxu1 }
 0x224   :  { %v386_v34 = vadd.f32 %v385_v33, %v384_v32 }
 0x226   :  { %vm333_vm1 = vcmp.gt.f32.partialorder %v386_v34, 0.0  ;;  %v387_v35 = vpop.f32.mrb[2].mxu1 }
 0x227   :  { %v337_v36 = vsel %vm333_vm1, 1.0, %v386_v34  ;;  %v388_v37 = vpop.f32.mrb[3].mxu1 }
 0x228   :  { %342 = vst.msk [vmem:[%s658_s3] sm:$0xff] %vm341_vm0, %v337_v36  ;;  %v389_v38 = vadd.f32 %v388_v37, %v387_v35 }
 0x22a   :  { %vm334_vm2 = vcmp.gt.f32.partialorder %v389_v38, 0.0  ;;  %v390_v39 = vpop.f32.mrb[4].mxu1 }
 0x22b   :  { %v338_v40 = vsel %vm334_vm2, 1.0, %v389_v38  ;;  %v391_v41 = vpop.f32.mrb[5].mxu1 }
 0x22c   :  { %343 = vst.msk [vmem:[%s658_s3 + $0x8] sm:$0xff] %vm341_vm0, %v338_v40  ;;  %v392_v42 = vadd.f32 %v391_v41, %v390_v39 }
 0x22e   :  { %vm335_vm3 = vcmp.gt.f32.partialorder %v392_v42, 0.0  ;;  %v393_v43 = vpop.f32.mrb[6].mxu1 }
 0x22f   :  { %v339_v44 = vsel %vm335_vm3, 1.0, %v392_v42  ;;  %v394_v45 = vpop.f32.mrb[7].mxu1 }
 0x230   :  { %344 = vst.msk [vmem:[%s658_s3 + $0x10] sm:$0xff] %vm341_vm0, %v339_v44  ;;  %v395_v46 = vadd.f32 %v394_v45, %v393_v43 }
 0x232   :  { %vm336_vm4 = vcmp.gt.f32.partialorder %v395_v46, 0.0 }
 0x233   :  { %v340_v47 = vsel %vm336_vm4, 1.0, %v395_v46 }
 0x234   :  { %345 = vst.msk [vmem:[%s658_s3 + $0x18] sm:$0xff] %vm341_vm0, %v340_v47 }
 0x235   :  { %350 = vsyncpa [#allocation3], 1 }
 0x236   :  { %351 = vsyncpa [#allocation5], 1 }

// kernel: run.5
= control target key start
LH: loop header
LB: loop body
LE: loop exit
PB: predicated region body
PF: predicated region fallthrough
CT: control target
= control target key end

     0   :  { %7 = vsyncpa [#allocation3], 0  ;;  %s1695_s0 = inlined_call_operand.vmem [shape: f32[320,1], index: 0, kind: input, shape index: {}]   ;;  %s1696_s1 = inlined_call_operand.vmem [shape: f32[1,320], index: 1, kind: input, shape index: {}]   ;;  %s1697_s2 = inlined_call_operand.hbm [shape: s8[320,320], index: 2, kind: output, shape index: {}]  }
   0x1   :  { %9 = vsyncpa [#allocation3 + $0x1], 0  ;;  %s774_s9 = smov 0   ;;  %s776_s10 = smov 0  }
   0x2   :  { %s778_s11 = smov 0   ;;  %s780_s12 = smov 0  }
   0x3 LB: > { %s795_s13 = sadd.s32 4294967295, %s752_s12   ;;  %s631_s14 = sadd.s32 4294967294, %s752_s12   ;;  %s752_s12 = sphi %s780_s12, %s1995_s12   ;;  %s748_s11 = sphi %s778_s11, %s1994_s11   ;;  %s744_s10 = sphi %s776_s10, %s1993_s10   ;;  %s740_s9 = sphi %s774_s9, %s1992_s9  }
   0x4   : > { %s799_s15 = sadd.s32 1, %s752_s12   ;;  %s69_s16 = sadd.s32 1, %s748_s11 }
   0x5   : > { %s66_s17 = ssub.s32 %s752_s12, %s799_s15  ;;  %p79_p0 = scmp.ne.s32.totalorder %s748_s11, %s744_s10 }
   0x6   : > { %p67_p1 = scmp.eq.s32.totalorder %s66_s17, 0  ;;  %p80_p2 = scmp.eq.s32.totalorder %s795_s13, 4 }
   0x7   : > { %p85_p3 = scmp.ne.s32.totalorder %s744_s10, %s740_s9  ;;  %p86_p4 = scmp.eq.s32.totalorder %s631_s14, 4 }
   0x8   : > { %s810_s18 = scalar_select %p67_p1, %s748_s11, %s69_s16  }
   0x9   : > { %p812_p5 = por %p80_p2, %p79_p0  ;;  %p816_p6 = por %p86_p4, %p85_p3 }
   0xa   : > { %p634_p7 = scmp.ge.s32.totalorder %s752_s12, 1  ;;  %p116_p8 = scmp.lt.s32.totalorder %s752_s12, 6 }
   0xc   : > { %p117_p9 = pnand %p634_p7, %p116_p8 }
   0xd   : > { %s635_s21 = sshll.u32 (!%p117_p9), %s795_s13, 3  ;;  %s637_s22 = sshll.u32 (!%p117_p9), %s795_s13, 6  ;;  %v146_v0 = vlaneseq (!%p117_p9)  ;;  %v754_v1 = vmov (!%p117_p9), 0   ;;  %vm755_vm1 = vmmov (!%p117_p9), 1   ;;  %v1752_v36 = vmov (!%p117_p9), 0 }
   0xe   : > { %120 = sbr.rel (%p117_p9) target bundleno = 292 (0x124), region = 28  ;;  %688 = vset.pattern.permute.xlu0 (!%p117_p9), %v754_v1  ;;  %689 = vset.pattern.permute.xlu1 (!%p117_p9), %v754_v1  ;;  %p139_p10 = scmp.lt.s32.totalorder (!%p117_p9), %s635_s21, 39  ;;  %v155_v2 = vstv (!%p117_p9), %s637_s22  ;;  %v184_v44 = vld [vmem:[%s1696_s1] sm:$0x7] (!%p117_p9)  ;;  %v1769_v27 = vmov (!%p117_p9), 0  ;;  %v1771_v31 = vmov (!%p117_p9), 0 }
   0xf   : > { %v827_v3 = vshrl.u32 (!%p117_p9), %v146_v0, 7  ;;  %v165_v52 = vand.u32 (!%p117_p9), 127, %v146_v0  ;;  %v1776_v34 = vmov (!%p117_p9), 0  ;;  %v1784_v39 = vmov (!%p117_p9), 0  ;;  %s135_s29 = sand.u32 (!%p117_p9), 1, %s744_s10   ;;  %s644_s4 = smul.u32 (!%p117_p9), 768, %s795_s13 }
  0x10   : > { %v1788_v41 = vmov (!%p117_p9), 0  ;;  %v1794_v43 = vmov (!%p117_p9), 0  ;;  %v1836_v58 = vmov (!%p117_p9), 0  ;;  %s643_s30 = smul.u32 (!%p117_p9), 48, %s135_s29  ;;  %s1654_s13 = scalar_lea.sflag (!%p117_p9), [#allocation3], %s135_s29 }
  0x11   : > { %v830_v4 = vadd.s32 (!%p117_p9), %v155_v2, %v827_v3  ;;  %v149_v5 = vadd.s32 (!%p117_p9), 16, %v827_v3  ;;  %v148_v6 = vadd.s32 (!%p117_p9), 8, %v827_v3  ;;  %v150_v7 = vadd.s32 (!%p117_p9), 24, %v827_v3  ;;  %s1644_s8 = scalar_lea.hbm (!%p117_p9), %s1697_s2, %s644_s4  ;;  %s756_s16 = smov (!%p117_p9), [#allocation2]  }
  0x12   : > { %v151_v13 = vadd.s32 (!%p117_p9), 32, %v827_v3  ;;  %v152_v16 = vadd.s32 (!%p117_p9), 40, %v827_v3  ;;  %v153_v21 = vadd.s32 (!%p117_p9), 48, %v827_v3  ;;  %v154_v25 = vadd.s32 (!%p117_p9), 56, %v827_v3  ;;  %s1522_s3 = scalar_lea.vmem (!%p117_p9), [#allocation2], %s643_s30  ;;  %s694_s17 = sshll.u32 (!%p117_p9), %s756_s16, 4  ;;  %s695_s17 = int_to_ptr.vmem [resolvable:$false] %s694_s17 }
  0x13   : > { %vm1701_vm0 = vcmp.lt.s32.totalorder (!%p117_p9), %v830_v4, 64  ;;  %v841_v8 = vadd.s32 (!%p117_p9), %v155_v2, %v149_v5  ;;  %v852_v12 = vadd.s32 (!%p117_p9), %v155_v2, %v148_v6  ;;  %v860_v15 = vadd.s32 (!%p117_p9), %v155_v2, %v150_v7  ;;  %s569_s5 = sshll.u32 (!%p117_p9), %s1522_s3, 4  ;;  %s1646_s5 = int_to_ptr.vmem [resolvable:$true] %s569_s5 }
  0x14   : > { %vm847_vm2 = vmxor (!%p117_p9), %vm1701_vm0, %vm755_vm1  ;;  %v873_v20 = vadd.s32 (!%p117_p9), %v155_v2, %v151_v13  ;;  %v882_v24 = vadd.s32 (!%p117_p9), %v155_v2, %v152_v16  ;;  %v903_v29 = vadd.s32 (!%p117_p9), %v155_v2, %v153_v21  ;;  %v918_v33 = vadd.s32 (!%p117_p9), %v155_v2, %v154_v25  ;;  %s690_s14 = scalar_lea.vmem (!%p117_p9), %s1646_s5, 768  ;;  %p697_p0 = scmp.lt.s32.totalorder (!%p117_p9), %s1646_s5, %s695_s17 }
  0x15   : > { %s1997_s21 = smov (!%p139_p10, %s635_s21), 39  ;;  %vm1698_vm4 = vcmp.lt.s32.totalorder %v841_v8, 64  ;;  %vm1699_vm8 = vcmp.lt.s32.totalorder %v852_v12, 64  ;;  %vm1700_vm11 = vcmp.lt.s32.totalorder %v860_v15, 64  ;;  %v995_v49 = vsub.s32 0, %v827_v3  ;;  %p691_p11 = scmp.ne.s32.totalorder %s1646_s5, %s690_s14 }
  0x16   : > { %s636_s23 = sshll.u32 %s1997_s21, 3  ;;  %vm867_vm7 = vmxor %vm1698_vm4, %vm755_vm1  ;;  %v223_v62 = vsub.s32 1, %v827_v3  ;;  %v227_v63 = vsub.s32 2, %v827_v3  ;;  %s696_s21 = scalar_lea.vmem %s695_s17, 1536 }
  0x17   : > { %s838_s26 = scalar_lea.vmem %s1695_s0, %s636_s23  ;;  %vm888_vm12 = vmxor %vm1699_vm8, %vm755_vm1  ;;  %vm1706_vm8 = vcmp.lt.s32.totalorder %v882_v24, 64  ;;  %p692_p12 = pnand %p691_p11, %p812_p5 }
  0x18   : > { %v168_v9 = vld [vmem:[%s838_s26] sm:$0xff]  ;;  %v170_v11 = vld [vmem:[%s838_s26 + $0x10] sm:$0xff]  ;;  %v169_v14 = vld [vmem:[%s838_s26 + $0x8] sm:$0xff]  ;;  %p698_p1 = scmp.lt.s32.totalorder %s696_s21, %s690_s14 }
  0x19   : > { %vm176_vm3 = vcmp.gt.f32.partialorder %v168_v9, 0.5  ;;  %vm178_vm6 = vcmp.gt.f32.partialorder %v170_v11, 0.5  ;;  %v171_v19 = vld [vmem:[%s838_s26 + $0x18] sm:$0xff]  ;;  %vm1704_vm10 = vcmp.gt.f32.partialorder %v169_v14, 0.5  ;;  %v172_v23 = vld [vmem:[%s838_s26 + $0x20] sm:$0xff]  ;;  %v173_v28 = vld [vmem:[%s838_s26 + $0x28] sm:$0xff]  ;;  %p693_p13 = pneg %p692_p12 }
  0x1a   : > { %vm205_vm5 = vmand %vm847_vm2, %vm176_vm3  ;;  %vm1702_vm13 = vcmp.gt.f32.partialorder %v171_v19, 0.5  ;;  %v174_v32 = vld [vmem:[%s838_s26 + $0x30] sm:$0xff]  ;;  %vm1708_vm0 = vcmp.gt.f32.partialorder %v173_v28, 0.5  ;;  %v175_v37 = vld [vmem:[%s838_s26 + $0x38] sm:$0xff]  ;;  %p699_p2 = por %p698_p1, %p697_p0 }
  0x1b   : > { %v274_v17 = vsel %vm205_vm5, 1, %v754_v1  ;;  %vm207_vm9 = vmand %vm867_vm7, %vm178_vm6  ;;  %vm1703_vm5 = vcmp.lt.s32.totalorder %v873_v20, 64 }
  0x1c   : > { %283 = vperm.xlu0 %688, %v274_v17   ;;  %v276_v22 = vsel %vm207_vm9, 1, %v754_v1  ;;  %vm894_vm14 = vmxor %vm176_vm3, %vm755_vm1  ;;  %vm1705_vm3 = vcmp.gt.f32.partialorder %v172_v23, 0.5  ;;  %p700_p3 = pnand %p699_p2, %p693_p13 }
  0x1d   : > { %289 = vperm.xlu1 %689, %v276_v22   ;;  %vm206_vm15 = vmand %vm888_vm12, %vm1704_vm10 }
  0x1e   : > { %v275_v30 = vsel %vm206_vm15, 1, %v754_v1  ;;  %vm909_vm9 = vmxor %vm1700_vm11, %vm755_vm1 }
  0x1f   : > { %vm208_vm4 = vmand %vm909_vm9, %vm1702_vm13 }
  0x20   : > { %286 = vperm.xlu0 %688, %v275_v30   ;;  %vm922_vm15 = vmxor %vm178_vm6, %vm755_vm1  ;;  %v277_v35 = vsel %vm208_vm4, 1, %v754_v1  ;;  %vm1710_vm6 = vcmp.lt.s32.totalorder %v903_v29, 64 }
  0x21   : > { %vm930_vm11 = vmxor %vm1703_vm5, %vm755_vm1  ;;  %292 = vperm.xlu1 %689, %v277_v35   ;;  %vm1712_vm5 = vcmp.gt.f32.partialorder %v174_v32, 0.5 }
  0x22   : > { %v1753_v36 = vsel %vm930_vm11, 4294967295, %v1752_v36  ;;  %vm209_vm13 = vmand %vm930_vm11, %vm1705_vm3  ;;  %vm1709_vm3 = vcmp.lt.s32.totalorder %v918_v33, 64 }
  0x23   : > { %v278_v38 = vsel %vm209_vm13, 1, %v754_v1  ;;  %vm943_vm4 = vmxor %vm1706_vm8, %vm755_vm1  ;;  %vm1711_vm8 = vcmp.gt.f32.partialorder %v175_v37, 0.5 }
  0x24   : > { %295 = vperm.xlu0 %688, %v278_v38   ;;  %vm210_vm10 = vmand %vm943_vm4, %vm1708_vm0  ;;  %v1781_v38 = vmov 0 }
  0x25   : > { %v279_v40 = vsel %vm210_vm10, 1, %v754_v1  ;;  %vm955_vm13 = vmxor %vm1710_vm6, %vm755_vm1 }
  0x26   : > { %298 = vperm.xlu1 %689, %v279_v40   ;;  %vm211_vm11 = vmand %vm955_vm13, %vm1712_vm5  ;;  %vm185_vm5 = vcmp.gt.f32.partialorder %v184_v44, 0.5  ;;  %v1786_v40 = vmov 0  ;;  %v1797_v44 = vmov 0 }
  0x27   : > { %v280_v42 = vsel %vm211_vm11, 1, %v754_v1  ;;  %vm966_vm0 = vmxor %vm1709_vm3, %vm755_vm1  ;;  %vm1760_vm3 = vcmp.gt.f32.partialorder %v169_v14, 0.5  ;;  %v216_v50 = vsel %vm185_vm5, 1, %v754_v1 }
  0x28   : > { %301 = vperm.xlu0 %688, %v280_v42   ;;  %vm212_vm10 = vmand %vm966_vm0, %vm1711_vm8  ;;  %v220_v54 = vrot.slane %v216_v50, %v995_v49  ;;  %v224_v14 = vrot.slane %v216_v50, %v223_v62  ;;  %v228_v16 = vrot.slane %v216_v50, %v227_v63  ;;  %v1792_v42 = vmov 0 }
  0x29   : > { %v281_v45 = vsel %vm212_vm10, 1, %v754_v1  ;;  %vm243_vm11 = vmand %vm847_vm2, %vm894_vm14  ;;  %vm1761_vm2 = vcmp.gt.f32.partialorder %v171_v19, 0.5  ;;  %v1809_v50 = vmov 0 }
  0x2a   : > { %304 = vperm.xlu1 %689, %v281_v45   ;;  %v399_v46 = vsel %vm243_vm11, 1, %v754_v1  ;;  %vm236_vm6 = vmxor %vm1760_vm3, %vm755_vm1  ;;  %vm1763_vm3 = vnez %v1753_v36 }
  0x2b   : > { %vm244_vm8 = vmand %vm888_vm12, %vm236_vm6  ;;  %vm1764_vm6 = vcmp.gt.f32.partialorder %v173_v28, 0.5 }
  0x2c   : > { %408 = vperm.xlu0 %688, %v399_v46   ;;  %v400_v47 = vsel %vm244_vm8, 1, %v754_v1  ;;  %vm245_vm10 = vmand %vm867_vm7, %vm922_vm15  ;;  %vm1762_vm8 = vcmp.gt.f32.partialorder %v172_v23, 0.5 }
  0x2d   : > { %v401_v48 = vsel %vm245_vm10, 1, %v754_v1  ;;  %vm238_vm14 = vmxor %vm1761_vm2, %vm755_vm1  ;;  %vm1765_vm10 = vcmp.gt.f32.partialorder %v174_v32, 0.5  ;;  %v1773_v32 = vmov 0 }
  0x2e   : > { %411 = vperm.xlu1 %689, %v400_v47   ;;  %vm246_vm12 = vmand %vm909_vm9, %vm238_vm14  ;;  %v1802_v47 = vmov 0 }
  0x2f   : > { %v402_v51 = vsel %vm246_vm12, 1, %v754_v1  ;;  %vm239_vm7 = vmxor %vm1762_vm8, %vm755_vm1  ;;  %vm194_vm12 = vcmp.lt.s32.totalorder %v165_v52, 64  ;;  %vm1766_vm8 = vcmp.gt.f32.partialorder %v175_v37, 0.5  ;;  %v1779_v37 = vmov 0 }
  0x30   : > { %414 = vperm.xlu0 %688, %v401_v48   ;;  %vm247_vm15 = vmand %vm1763_vm3, %vm239_vm7  ;;  %vm229_vm3 = vcmp.ne.s32.totalorder %v220_v54, 0  ;;  %v1804_v48 = vmov 0  ;;  %v1813_v52 = vmov 0 }
  0x31   : > { %v403_v53 = vsel %vm247_vm15, 1, %v754_v1  ;;  %vm240_vm11 = vmxor %vm1764_vm6, %vm755_vm1 }
  0x32   : > { %417 = vperm.xlu1 %689, %v402_v51   ;;  %vm248_vm9 = vmand %vm943_vm4, %vm240_vm11  ;;  %v1811_v51 = vmov 0 }
  0x33   : > { %v404_v55 = vsel %vm248_vm9, 1, %v754_v1  ;;  %vm241_vm2 = vmxor %vm1765_vm10, %vm755_vm1 }
  0x34   : > { %420 = vperm.xlu0 %688, %v403_v53   ;;  %vm249_vm14 = vmand %vm955_vm13, %vm241_vm2  ;;  %v1823_v53 = vmov 0 }
  0x35   : > { %v405_v56 = vsel %vm249_vm14, 1, %v754_v1  ;;  %vm242_vm7 = vmxor %vm1766_vm8, %vm755_vm1 }
  0x36   : > { %423 = vperm.xlu1 %689, %v404_v55   ;;  %vm250_vm4 = vmand %vm966_vm0, %vm242_vm7 }
  0x37   : > { %v406_v57 = vsel %vm250_vm4, 1, %v754_v1  ;;  %vm1026_vm15 = vmxor %vm194_vm12, %vm755_vm1 }
  0x38   : > { %426 = vperm.xlu0 %688, %v405_v56   ;;  %vm232_vm13 = vmand %vm1026_vm15, %vm229_vm3  ;;  %v1829_v56 = vmov 0 }
  0x39   : > { %vm271_vm6 = vmor %vm194_vm12, %vm232_vm13 }
  0x3a   : > { %429 = vperm.xlu1 %689, %v406_v57   ;;  %v314_v59 = vsel %vm271_vm6, 1, %v754_v1  ;;  %vm251_vm0 = vmxor %vm185_vm5, %vm755_vm1  ;;  %vm230_vm1 = vcmp.ne.s32.totalorder %v224_v14, 0  ;;  %vm231_vm5 = vcmp.ne.s32.totalorder %v228_v16, 0  ;;  %v1831_v57 = vmov 0 }
  0x3b   : > { %v320_v60 = vrot.slane %v314_v59, %v995_v49  ;;  %v252_v61 = vsel %vm251_vm0, 1, %v754_v1  ;;  %v315_v19 = vsel %vm230_vm1, 1, %v754_v1  ;;  %v316_v23 = vsel %vm231_vm5, 1, %v754_v1 }
  0x3c   : > { %v256_v0 = vrot.slane %v252_v61, %v995_v49  ;;  %v260_v2 = vrot.slane %v252_v61, %v223_v62  ;;  %v264_v5 = vrot.slane %v252_v61, %v227_v63  ;;  %v324_v25 = vrot.slane %v315_v19, %v995_v49 }
  0x3d   : > { %v328_v26 = vrot.slane %v316_v23, %v995_v49  ;;  %vm1775_vm0 = vcmp.lt.s32.totalorder %v830_v4, 64  ;;  %v1790_v4 = vmov 0  ;;  %v1839_v59 = vmov 0 }
  0x3e   : > { %vm265_vm11 = vcmp.ne.s32.totalorder %v256_v0, 0  ;;  %vm266_vm10 = vcmp.ne.s32.totalorder %v260_v2, 0  ;;  %vm267_vm2 = vcmp.ne.s32.totalorder %v264_v5, 0  ;;  %vm1062_vm7 = vcmp.eq.s32.totalorder %v324_v25, 1  ;;  %vm1783_vm1 = vmmov %vm1775_vm0 }
  0x3f   : > { %vm268_vm9 = vmand %vm1026_vm15, %vm265_vm11  ;;  %v440_v7 = vsel %vm266_vm10, 1, %v754_v1  ;;  %v441_v9 = vsel %vm267_vm2, 1, %v754_v1  ;;  %v1772_v31 = vsel %vm1062_vm7, 4294967295, %v1771_v31  ;;  %vm1066_vm3 = vcmp.eq.s32.totalorder %v328_v26, 1 }
  0x40   : > { %vm396_vm14 = vmor %vm194_vm12, %vm268_vm9  ;;  %v449_v10 = vrot.slane %v440_v7, %v995_v49  ;;  %v453_v11 = vrot.slane %v441_v9, %v995_v49  ;;  %vm1054_vm12 = vcmp.eq.s32.totalorder %v320_v60, 1  ;;  %v1774_v32 = vsel %vm1066_vm3, 4294967295, %v1773_v32 }
  0x41   : > { %v439_v6 = vsel %vm396_vm14, 1, %v754_v1  ;;  %v1770_v27 = vsel %vm1054_vm12, 4294967295, %v1769_v27  ;;  %vm1778_vm10 = vmmov %vm1775_vm0  ;;  %v1843_v61 = vmov 0  ;;  %v1852_v5 = vmov 0 }
  0x42   : > { %v445_v3 = vrot.slane %v439_v6, %v995_v49  ;;  %v1870_v16 = vmov 0  ;;  %v1886_v19 = vmov 0  ;;  %v1892_v23 = vmov 0 }
  0x43   : > { %v1894_v25 = vmov 0  ;;  %v1932_v49 = vmov 0 }
  0x9b   : > { %v284_v13 = vpop.permute.xlu0 %283 }
  0x9c   : > { %v290_v17 = vpop.permute.xlu1 %289  ;;  %vm306_vm8 = vcmp.eq.s32.totalorder %v284_v13, 1 }
  0x9d   : > { %vm332_vm4 = vmand %vm306_vm8, %vm1054_vm12  ;;  %vm308_vm13 = vcmp.eq.s32.totalorder %v290_v17, 1  ;;  %v1873_v17 = vmov 0 }
  0x9e   : > { %vm333_vm15 = vmand %vm306_vm8, %vm1062_vm7 }
  0x9f   : > { %v287_v18 = vpop.permute.xlu0 %286  ;;  %vm334_vm6 = vmand %vm306_vm8, %vm1066_vm3 }
  0xa0   : > { %v293_v21 = vpop.permute.xlu1 %292  ;;  %vm1078_vm11 = vmor %vm1775_vm0, %vm332_vm4  ;;  %vm307_vm9 = vcmp.eq.s32.totalorder %v287_v18, 1  ;;  %vm1116_vm0 = vcmp.eq.s32.totalorder %v445_v3, 1 }
  0xa1   : > { %v1777_v34 = vsel %vm1078_vm11, 4294967295, %v1776_v34  ;;  %vm1086_vm2 = vmor %vm1778_vm10, %vm333_vm15  ;;  %v1791_v4 = vsel %vm1116_vm0, 4294967295, %v1790_v4 }
  0xa2   : > { %v1780_v37 = vsel %vm1086_vm2, 4294967295, %v1779_v37  ;;  %vm1092_vm14 = vmand %vm308_vm13, %vm1054_vm12 }
  0xa3   : > { %v296_v22 = vpop.permute.xlu0 %295  ;;  %v1782_v38 = vsel %vm1092_vm14, 4294967295, %v1781_v38  ;;  %vm1098_vm5 = vmor %vm1783_vm1, %vm334_vm6  ;;  %vm309_vm1 = vcmp.eq.s32.totalorder %v293_v21, 1  ;;  %vm1122_vm14 = vcmp.eq.s32.totalorder %v449_v10, 1  ;;  %v1859_v10 = vmov 0 }
  0xa4   : > { %v1785_v39 = vsel %vm1098_vm5, 4294967295, %v1784_v39  ;;  %vm1104_vm8 = vmand %vm308_vm13, %vm1062_vm7  ;;  %v1793_v42 = vsel %vm1122_vm14, 4294967295, %v1792_v42 }
  0xa5   : > { %v1058_v28 = vpop.permute.xlu1 %298  ;;  %v1787_v40 = vsel %vm1104_vm8, 4294967295, %v1786_v40  ;;  %vm1110_vm4 = vmand %vm308_vm13, %vm1066_vm3  ;;  %vm1796_vm8 = vcmp.lt.s32.totalorder %v852_v12, 64  ;;  %v1816_v12 = vmov 0 }
  0xa6   : > { %v1789_v41 = vsel %vm1110_vm4, 4294967295, %v1788_v41  ;;  %vm335_vm15 = vmand %vm307_vm9, %vm1054_vm12  ;;  %vm1128_vm4 = vcmp.eq.s32.totalorder %v453_v11, 1  ;;  %v1863_v11 = vmov 0 }
  0xa7   : > { %v1060_v30 = vpop.permute.xlu0 %301  ;;  %vm336_vm10 = vmand %vm307_vm9, %vm1062_vm7  ;;  %v1795_v43 = vsel %vm1128_vm4, 4294967295, %v1794_v43 }
  0xa8   : > { %vm337_vm13 = vmand %vm307_vm9, %vm1066_vm3 }
  0xa9   : > { %v1082_v35 = vpop.permute.xlu1 %304  ;;  %vm1134_vm5 = vmor %vm1796_vm8, %vm335_vm15 }
  0xaa   : > { %v1798_v44 = vsel %vm1134_vm5, 4294967295, %v1797_v44  ;;  %vm1801_vm11 = vmmov %vm1796_vm8 }
  0xab   : > { %v409_v36 = vpop.permute.xlu0 %408  ;;  %vm1146_vm9 = vmor %vm1801_vm11, %vm336_vm10 }
  0xac   : > { %vm431_vm6 = vcmp.eq.s32.totalorder %v409_v36, 1  ;;  %v1803_v47 = vsel %vm1146_vm9, 4294967295, %v1802_v47  ;;  %vm1152_vm3 = vmand %vm309_vm1, %vm1054_vm12 }
  0xad   : > { %vm1140_vm2 = vmand %vm431_vm6, %vm1116_vm0  ;;  %v412_v46 = vpop.permute.xlu1 %411  ;;  %v1805_v48 = vsel %vm1152_vm3, 4294967295, %v1804_v48  ;;  %vm1815_vm3 = vnez %v1774_v32 }
  0xae   : > { %vm1158_vm8 = vmand %vm431_vm6, %vm1122_vm14 }
  0xaf   : > { %vm1808_vm15 = vmmov %vm1801_vm11  ;;  %v415_v55 = vpop.permute.xlu0 %414 }
  0xb0   : > { %vm1164_vm5 = vmor %vm1808_vm15, %vm337_vm13  ;;  %vm1818_vm13 = vnez %v1777_v34  ;;  %v1905_v34 = vmov 0 }
  0xb1   : > { %v1810_v50 = vsel %vm1164_vm5, 4294967295, %v1809_v50  ;;  %vm1170_vm11 = vmand %vm309_vm1, %vm1062_vm7  ;;  %vm432_vm5 = vcmp.eq.s32.totalorder %v412_v46, 1  ;;  %vm310_vm7 = vcmp.eq.s32.totalorder %v296_v22, 1  ;;  %v418_v3 = vpop.permute.xlu1 %417 }
  0xb2   : > { %v1812_v51 = vsel %vm1170_vm11, 4294967295, %v1811_v51  ;;  %vm1176_vm10 = vmand %vm431_vm6, %vm1128_vm4  ;;  %vm1819_vm6 = vnez %v1780_v37  ;;  %vm1820_vm4 = vnez %v1785_v39 }
  0xb3   : > { %v1814_v52 = vsel %vm1176_vm10, 4294967295, %v1813_v52  ;;  %vm1182_vm9 = vmand %vm309_vm1, %vm1815_vm3  ;;  %vm1821_vm3 = vnez %v1782_v38  ;;  %v421_v22 = vpop.permute.xlu0 %420 }
  0xb4   : > { %v1817_v12 = vsel %vm1182_vm9, 4294967295, %v1816_v12  ;;  %vm481_vm15 = vmor %vm1818_vm13, %vm1140_vm2  ;;  %vm1822_vm9 = vcmp.lt.s32.totalorder %v841_v8, 64 }
  0xb5   : > { %vm482_vm11 = vmor %vm1819_vm6, %vm1158_vm8  ;;  %vm1827_vm8 = vnez %v1787_v40  ;;  %v505_v60 = vsel %vm481_vm15, 1, %v754_v1 }
  0xb6   : > { %vm1202_vm14 = vmor %vm1822_vm9, %vm1821_vm3  ;;  %v1252_v8 = vsel %vm482_vm11, 1, %v754_v1 }
  0xb7   : > { %v1824_v53 = vsel %vm1202_vm14, 4294967295, %v1823_v53  ;;  %vm1208_vm2 = vmand %vm432_vm5, %vm1116_vm0  ;;  %vm1834_vm14 = vnez %v1789_v41  ;;  %v1920_v41 = vmov 0 }
  0xb8   : > { %vm1828_vm13 = vmmov %vm1822_vm9  ;;  %vm1833_vm9 = vnez %v1793_v42 }
  0xb9   : > { %vm1216_vm6 = vmor %vm1828_vm13, %vm1827_vm8  ;;  %vm1838_vm8 = vnez %v1772_v31 }
  0xba   : > { %v1830_v56 = vsel %vm1216_vm6, 4294967295, %v1829_v56  ;;  %vm1222_vm3 = vmand %vm310_vm7, %vm1054_vm12 }
  0xbb   : > { %v1832_v57 = vsel %vm1222_vm3, 4294967295, %v1831_v57  ;;  %vm461_vm1 = vmand %vm432_vm5, %vm1833_vm9  ;;  %vm1841_vm3 = vnez %v1795_v43  ;;  %vm1842_vm9 = vnez %v1774_v32 }
  0xbc   : > { %vm1835_vm0 = vmmov %vm1828_vm13 }
  0xbd   : > { %vm1232_vm10 = vmor %vm1835_vm0, %vm1834_vm14  ;;  %vm1845_vm14 = vnez %v1798_v44 }
  0xbe   : > { %v1837_v58 = vsel %vm1232_vm10, 4294967295, %v1836_v58  ;;  %vm1238_vm13 = vmand %vm310_vm7, %vm1838_vm8  ;;  %vm1849_vm10 = vnez %v1810_v50 }
  0xbf   : > { %v1840_v59 = vsel %vm1238_vm13, 4294967295, %v1839_v59  ;;  %vm462_vm6 = vmand %vm432_vm5, %vm1841_vm3  ;;  %vm433_vm13 = vcmp.eq.s32.totalorder %v415_v55, 1  ;;  %vm1846_vm5 = vnez %v1814_v52  ;;  %v1961_v55 = vmov 0 }
  0xc0   : > { %vm1247_vm12 = vmand %vm310_vm7, %vm1842_vm9 }
  0xc1   : > { %v1844_v61 = vsel %vm1247_vm12, 4294967295, %v1843_v61  ;;  %vm484_vm0 = vmor %vm1845_vm14, %vm1208_vm2  ;;  %vm1848_vm12 = vnez %v1803_v47  ;;  %vm1850_vm2 = vnez %v1805_v48  ;;  %vm1851_vm14 = vcmp.lt.s32.totalorder %v860_v15, 64  ;;  %v424_v47 = vpop.permute.xlu1 %423 }
  0xc2   : > { %vm1847_vm7 = vmor %vm1820_vm4, %vm1846_vm5  ;;  %v508_v63 = vsel %vm484_vm0, 1, %v754_v1  ;;  %vm1862_vm0 = vcmp.eq.s32.totalorder %v1058_v28, 1  ;;  %v1879_v15 = vmov 0  ;;  %v1901_v28 = vmov 0 }
  0xc3   : > { %v1265_v62 = vsel %vm1847_vm7, 1, %v754_v1  ;;  %vm485_vm11 = vmor %vm1848_vm12, %vm461_vm1  ;;  %v529_v2 = vpack.c.b16 %v508_v63, %v505_v60  ;;  %vm1854_vm12 = vnez %v1791_v4  ;;  %vm1865_vm7 = vnez %v1793_v42 }
  0xc4   : > { %vm486_vm9 = vmor %vm1849_vm10, %vm462_vm6  ;;  %v509_v0 = vsel %vm485_vm11, 1, %v754_v1  ;;  %vm1857_vm10 = vnez %v1812_v51  ;;  %v1928_v48 = vmov 0 }
  0xc5   : > { %vm1277_vm15 = vmor %vm1851_vm14, %vm1850_vm2  ;;  %v510_v6 = vsel %vm486_vm9, 1, %v754_v1  ;;  %v532_v7 = vpack.c.b16 %v509_v0, %v1252_v8  ;;  %vm1861_vm9 = vnez %v1770_v27  ;;  %vm1868_vm2 = vnez %v1817_v12  ;;  %v430_v0 = vpop.permute.xlu1 %429 }
  0xc6   : > { %v1853_v5 = vsel %vm1277_vm15, 4294967295, %v1852_v5  ;;  %vm1286_vm4 = vmand %vm433_vm13, %vm1854_vm12  ;;  %v535_v13 = vpack.c.b16 %v510_v6, %v1265_v62  ;;  %vm1882_vm15 = vnez %v1830_v56  ;;  %v1943_v12 = vmov 0 }
  0xc7   : > { %vm1858_vm1 = vmmov %vm1851_vm14  ;;  %v1973_v8 = vmov 0  ;;  %v1983_v6 = vmov 0 }
  0xc8   : > { %vm1294_vm6 = vmor %vm1858_vm1, %vm1857_vm10 }
  0xc9   : > { %v1860_v10 = vsel %vm1294_vm6, 4294967295, %v1859_v10  ;;  %vm1302_vm5 = vmand %vm1862_vm0, %vm1861_vm9  ;;  %vm1733_vm6 = vcmp.eq.s32.totalorder %v418_v3, 1 }
  0xca   : > { %v1864_v11 = vsel %vm1302_vm5, 4294967295, %v1863_v11  ;;  %vm1310_vm11 = vmand %vm433_vm13, %vm1865_vm7 }
  0xcb   : > { %vm1869_vm14 = vmmov %vm1858_vm1 }
  0xcc   : > { %vm1318_vm10 = vmor %vm1869_vm14, %vm1868_vm2  ;;  %vm1877_vm2 = vnez %v1774_v32 }
  0xcd   : > { %v1871_v16 = vsel %vm1318_vm10, 4294967295, %v1870_v16  ;;  %vm1872_vm1 = vmmov %vm1862_vm0 }
  0xce   : > { %vm1326_vm0 = vmand %vm1872_vm1, %vm1838_vm8  ;;  %vm1885_vm8 = vcmp.lt.s32.totalorder %v873_v20, 64 }
  0xcf   : > { %v1874_v17 = vsel %vm1326_vm0, 4294967295, %v1873_v17  ;;  %vm1333_vm5 = vmand %vm433_vm13, %vm1841_vm3  ;;  %vm1731_vm13 = vcmp.eq.s32.totalorder %v1060_v30, 1 }
  0xd0   : > { %vm1878_vm14 = vmmov %vm1872_vm1  ;;  %vm1881_vm1 = vnez %v1824_v53 }
  0xd1   : > { %vm1341_vm10 = vmand %vm1878_vm14, %vm1877_vm2  ;;  %vm1883_vm14 = vnez %v1837_v58 }
  0xd2   : > { %v1880_v15 = vsel %vm1341_vm10, 4294967295, %v1879_v15  ;;  %vm487_vm0 = vmor %vm1881_vm1, %vm1286_vm4  ;;  %vm1884_vm10 = vnez %v1832_v57  ;;  %vm1890_vm1 = vnez %v1840_v59 }
  0xd3   : > { %vm1363_vm7 = vmor %vm1885_vm8, %vm1884_vm10  ;;  %vm1896_vm10 = vnez %v1793_v42  ;;  %v511_v36 = vsel %vm487_vm0, 1, %v754_v1  ;;  %vm1914_vm0 = vnez %v1853_v5 }
  0xd4   : > { %v1887_v19 = vsel %vm1363_vm7, 4294967295, %v1886_v19  ;;  %vm1370_vm4 = vmand %vm1733_vm6, %vm1854_vm12 }
  0xd5   : > { %vm1891_vm2 = vmmov %vm1885_vm8 }
  0xd6   : > { %vm1378_vm3 = vmor %vm1891_vm2, %vm1890_vm1  ;;  %vm1899_vm2 = vnez %v1844_v61  ;;  %vm1900_vm1 = vcmp.lt.s32.totalorder %v873_v20, 64  ;;  %v1911_v20 = vmov 0 }
  0xd7   : > { %v1893_v23 = vsel %vm1378_vm3, 4294967295, %v1892_v23  ;;  %vm1386_vm8 = vmand %vm1731_vm13, %vm1861_vm9  ;;  %vm1903_vm13 = vnez %v1772_v31  ;;  %vm1904_vm9 = vcmp.eq.s32.totalorder %v1060_v30, 1 }
  0xd8   : > { %v1895_v25 = vsel %vm1386_vm8, 4294967295, %v1894_v25  ;;  %vm1393_vm7 = vmand %vm1733_vm6, %vm1896_vm10  ;;  %vm1907_vm6 = vnez %v1795_v43  ;;  %vm1908_vm10 = vcmp.eq.s32.totalorder %v418_v3, 1 }
  0xd9   : > { %vm1401_vm3 = vmor %vm1900_vm1, %vm1899_vm2  ;;  %vm1909_vm2 = vnez %v1774_v32  ;;  %v1957_v32 = vmov 0 }
  0xda   : > { %v1902_v28 = vsel %vm1401_vm3, 4294967295, %v1901_v28  ;;  %vm1409_vm8 = vmand %vm1904_vm9, %vm1903_vm13 }
  0xdb   : > { %v1906_v34 = vsel %vm1409_vm8, 4294967295, %v1905_v34  ;;  %vm468_vm12 = vmand %vm1908_vm10, %vm1907_vm6  ;;  %vm1919_vm6 = vcmp.lt.s32.totalorder %v882_v24, 64  ;;  %v1950_v24 = vmov 0 }
  0xdc   : > { %vm1910_vm1 = vmmov %vm1904_vm9 }
  0xdd   : > { %vm1423_vm3 = vmand %vm1910_vm1, %vm1909_vm2 }
  0xde   : > { %v1912_v20 = vsel %vm1423_vm3, 4294967295, %v1911_v20  ;;  %vm1913_vm9 = vmor %vm1882_vm15, %vm1310_vm11  ;;  %vm1916_vm15 = vnez %v1860_v10 }
  0xdf   : > { %v512_v37 = vsel %vm1913_vm9, 1, %v754_v1  ;;  %vm490_vm10 = vmor %vm1914_vm0, %vm1370_vm4  ;;  %vm1917_vm9 = vnez %v1871_v16  ;;  %vm1918_vm0 = vnez %v1864_v11 }
  0xe0   : > { %vm1915_vm1 = vmor %vm1883_vm14, %vm1333_vm5  ;;  %v514_v38 = vsel %vm490_vm10, 1, %v754_v1  ;;  %vm1922_vm5 = vnez %v1791_v4 }
  0xe1   : > { %v513_v30 = vsel %vm1915_vm1, 1, %v754_v1  ;;  %vm491_vm11 = vmor %vm1916_vm15, %vm1393_vm7  ;;  %v530_v40 = vpack.c.b16 %v514_v38, %v511_v36  ;;  %vm1923_vm7 = vcmp.eq.s32.totalorder %v421_v22, 1  ;;  %vm1931_vm15 = vcmp.eq.s32.totalorder %v1082_v35, 1  ;;  %v427_v35 = vpop.permute.xlu0 %426 }
  0xe2   : > { %vm492_vm4 = vmor %vm1917_vm9, %vm468_vm12  ;;  %v515_v39 = vsel %vm491_vm11, 1, %v754_v1  ;;  %vm1926_vm12 = vnez %v1874_v17  ;;  %vm1934_vm9 = vnez %v1793_v42 }
  0xe3   : > { %vm1456_vm8 = vmor %vm1919_vm6, %vm1918_vm0  ;;  %v516_v44 = vsel %vm492_vm4, 1, %v754_v1  ;;  %v533_v45 = vpack.c.b16 %v515_v39, %v512_v37  ;;  %v531_v50 = vpack.c.b8 %v530_v40, %v529_v2  ;;  %v1978_v2 = vmov 0 }
  0xe4   : > { %v1921_v41 = vsel %vm1456_vm8, 4294967295, %v1920_v41  ;;  %vm1464_vm14 = vmand %vm1923_vm7, %vm1922_vm5  ;;  %v536_v51 = vpack.c.b16 %v516_v44, %v513_v30 }
  0xe5   : > { %vm1927_vm10 = vmmov %vm1919_vm6  ;;  %vm1930_vm6 = vnez %v1770_v27  ;;  %v1940_v27 = vmov 0  ;;  %v534_v53 = vpack.c.b8 %v533_v45, %v532_v7  ;;  %547 = vst [vmem:[%s1522_s3] sm:$0xff] %v531_v50 }
  0xe6   : > { %vm1472_vm1 = vmor %vm1927_vm10, %vm1926_vm12  ;;  %v537_v31 = vpack.c.b8 %v536_v51, %v535_v13 }
  0xe7   : > { %v1929_v48 = vsel %vm1472_vm1, 4294967295, %v1928_v48  ;;  %vm1480_vm11 = vmand %vm1931_vm15, %vm1930_vm6  ;;  %vm1946_vm1 = vcmp.eq.s32.totalorder %v421_v22, 1  ;;  %548 = vst [vmem:[%s1522_s3 + $0x8] sm:$0xff] %v534_v53 }
  0xe8   : > { %v1933_v49 = vsel %vm1480_vm11, 4294967295, %v1932_v49  ;;  %vm1935_vm4 = vmmov %vm1923_vm7  ;;  %vm1938_vm7 = vnez %v1880_v15  ;;  %vm1945_vm11 = vnez %v1795_v43 }
  0xe9   : > { %vm1487_vm0 = vmand %vm1935_vm4, %vm1934_vm9  ;;  %vm1735_vm4 = vcmask 523264  }
  0xea   : > { %vm1939_vm12 = vmmov %vm1927_vm10  ;;  %550 = vst.msk [vmem:[%s1522_s3 + $0x10] sm:$0xff] %vm1735_vm4, %v537_v31  ;;  %vm1967_vm4 = vnez %v1795_v43 }
  0xeb   : > { %vm1495_vm10 = vmor %vm1939_vm12, %vm1938_vm7 }
  0xec   : > { %v1941_v27 = vsel %vm1495_vm10, 4294967295, %v1940_v27  ;;  %vm1942_vm6 = vmmov %vm1931_vm15  ;;  %vm1955_vm10 = vnez %v1895_v25 }
  0xed   : > { %vm1503_vm15 = vmand %vm1942_vm6, %vm1903_vm13  ;;  %vm1952_vm13 = vnez %v1887_v19 }
  0xee   : > { %v1944_v12 = vsel %vm1503_vm15, 4294967295, %v1943_v12  ;;  %vm1510_vm8 = vmand %vm1946_vm1, %vm1945_vm11  ;;  %vm1956_vm11 = vcmp.lt.s32.totalorder %v903_v29, 64 }
  0xef   : > { %vm1949_vm7 = vmmov %vm1942_vm6  ;;  %vm436_vm6 = vcmp.eq.s32.totalorder %v424_v47, 1 }
  0xf0   : > { %vm1518_vm12 = vmand %vm1949_vm7, %vm1909_vm2  ;;  %vm1953_vm2 = vnez %v1893_v23 }
  0xf1   : > { %v1951_v24 = vsel %vm1518_vm12, 4294967295, %v1950_v24  ;;  %vm493_vm1 = vmor %vm1952_vm13, %vm1464_vm14  ;;  %vm1954_vm12 = vnez %v1902_v28 }
  0xf2   : > { %vm494_vm7 = vmor %vm1953_vm2, %vm1487_vm0  ;;  %vm1959_vm0 = vnez %v1906_v34  ;;  %v517_v57 = vsel %vm493_vm1, 1, %v754_v1  ;;  %vm1971_vm1 = vnez %v1933_v49 }
  0xf3   : > { %vm495_vm15 = vmor %vm1954_vm12, %vm1510_vm8  ;;  %v518_v58 = vsel %vm494_vm7, 1, %v754_v1 }
  0xf4   : > { %vm1544_vm3 = vmor %vm1956_vm11, %vm1955_vm10  ;;  %v519_v59 = vsel %vm495_vm15, 1, %v754_v1 }
  0xf5   : > { %v1958_v32 = vsel %vm1544_vm3, 4294967295, %v1957_v32  ;;  %vm472_vm14 = vmand %vm436_vm6, %vm1922_vm5 }
  0xf6   : > { %vm1960_vm13 = vmmov %vm1956_vm11  ;;  %vm1963_vm11 = vnez %v1912_v20 }
  0xf7   : > { %vm1554_vm2 = vmor %vm1960_vm13, %vm1959_vm0  ;;  %vm1968_vm0 = vnez %v1921_v41 }
  0xf8   : > { %v1962_v55 = vsel %vm1554_vm2, 4294967295, %v1961_v55  ;;  %vm473_vm8 = vmand %vm436_vm6, %vm1934_vm9  ;;  %vm437_vm2 = vcmp.eq.s32.totalorder %v427_v35, 1  ;;  %vm1969_vm9 = vnez %v1929_v48 }
  0xf9   : > { %vm1964_vm10 = vmmov %vm1960_vm13 }
  0xfa   : > { %vm1564_vm12 = vmor %vm1964_vm10, %vm1963_vm11  ;;  %vm1970_vm11 = vnez %v1941_v27 }
  0xfb   : > { %vm474_vm3 = vmand %vm436_vm6, %vm1967_vm4  ;;  %vm1972_vm6 = vcmp.lt.s32.totalorder %v918_v33, 64 }
  0xfc   : > { %vm496_vm13 = vmor %vm1968_vm0, %vm472_vm14 }
  0xfd   : > { %vm497_vm5 = vmor %vm1969_vm9, %vm473_vm8  ;;  %v520_v29 = vsel %vm496_vm13, 1, %v754_v1  ;;  %vm1975_vm9 = vnez %v1791_v4  ;;  %vm1980_vm8 = vnez %v1793_v42  ;;  %vm1981_vm13 = vnez %v1951_v24 }
  0xfe   : > { %vm498_vm10 = vmor %vm1970_vm11, %vm474_vm3  ;;  %v521_v60 = vsel %vm497_vm5, 1, %v754_v1  ;;  %v538_v61 = vpack.c.b16 %v520_v29, %v517_v57  ;;  %vm1976_vm3 = vnez %v1944_v12 }
  0xff   : > { %vm1585_vm7 = vmor %vm1972_vm6, %vm1971_vm1  ;;  %v522_v62 = vsel %vm498_vm10, 1, %v754_v1  ;;  %v541_v63 = vpack.c.b16 %v521_v60, %v518_v58 }
 0x100   : > { %v1974_v8 = vsel %vm1585_vm7, 4294967295, %v1973_v8  ;;  %vm475_vm15 = vmand %vm437_vm2, %vm1975_vm9  ;;  %v544_v5 = vpack.c.b16 %v522_v62, %v519_v59 }
 0x101   : > { %vm1977_vm5 = vmmov %vm1972_vm6  ;;  %vm1985_vm6 = vnez %v1958_v32 }
 0x102   : > { %vm1597_vm14 = vmor %vm1977_vm5, %vm1976_vm3 }
 0x103   : > { %v1979_v2 = vsel %vm1597_vm14, 4294967295, %v1978_v2  ;;  %vm476_vm0 = vmand %vm437_vm2, %vm1980_vm8  ;;  %vm1986_vm14 = vnez %v1962_v55 }
 0x104   : > { %vm1982_vm11 = vmmov %vm1977_vm5  ;;  %vm438_vm5 = vcmp.eq.s32.totalorder %v430_v0, 1 }
 0x105   : > { %vm1608_vm10 = vmor %vm1982_vm11, %vm1981_vm13  ;;  %vm1987_vm11 = vnez %v1793_v42 }
 0x106   : > { %v1984_v6 = vsel %vm1608_vm10, 4294967295, %v1983_v6  ;;  %vm477_vm1 = vmand %vm437_vm2, %vm1967_vm4 }
 0x107   : > { %vm499_vm3 = vmor %vm1985_vm6, %vm475_vm15  ;;  %vm1988_vm15 = vnez %v1974_v8 }
 0x108   : > { %vm500_vm7 = vmor %vm1986_vm14, %vm476_vm0  ;;  %v523_v33 = vsel %vm499_vm3, 1, %v754_v1 }
 0x109   : > { %vm501_vm8 = vmor %vm1564_vm12, %vm477_vm1  ;;  %v524_v7 = vsel %vm500_vm7, 1, %v754_v1  ;;  %vm1989_vm12 = vnez %v1979_v2  ;;  %vm1991_vm7 = vcmask 523264  }
 0x10a   : > { %vm478_vm13 = vmand %vm438_vm5, %vm1975_vm9  ;;  %v525_v9 = vsel %vm501_vm8, 1, %v754_v1  ;;  %vm1990_vm9 = vnez %v1984_v6 }
 0x10b   : > { %vm479_vm10 = vmand %vm438_vm5, %vm1987_vm11 }
 0x10c   : > { %vm480_vm2 = vmand %vm438_vm5, %vm1967_vm4 }
 0x10d   : > { %vm502_vm6 = vmor %vm1988_vm15, %vm478_vm13 }
 0x10e   : > { %vm503_vm14 = vmor %vm1989_vm12, %vm479_vm10  ;;  %v526_v4 = vsel %vm502_vm6, 1, %v754_v1 }
 0x10f   : > { %vm504_vm4 = vmor %vm1990_vm9, %vm480_vm2  ;;  %v527_v42 = vsel %vm503_vm14, 1, %v754_v1  ;;  %v539_v43 = vpack.c.b16 %v526_v4, %v523_v33 }
 0x110   : > { %v528_v3 = vsel %vm504_vm4, 1, %v754_v1  ;;  %v542_v10 = vpack.c.b16 %v527_v42, %v524_v7 }
 0x111   : > { %v540_v11 = vpack.c.b8 %v539_v43, %v538_v61  ;;  %v545_v13 = vpack.c.b16 %v528_v3, %v525_v9 }
 0x112   : > { %v543_v14 = vpack.c.b8 %v542_v10, %v541_v63 }
 0x113   : > { %v546_v16 = vpack.c.b8 %v545_v13, %v544_v5  ;;  %551 = vst [vmem:[%s1522_s3 + $0x18] sm:$0xff] %v540_v11 }
 0x114   : > { %552 = vst [vmem:[%s1522_s3 + $0x20] sm:$0xff] %v543_v14 }
 0x115   : > { %553 = vst.msk [vmem:[%s1522_s3 + $0x28] sm:$0xff] %vm1991_vm7, %v546_v16 }
 0x116   : > { %703 = shalt.err (!%p700_p3)
}
 0x117   : > { %s704_s22 = scalar_lea.hbm %s1644_s8, 768  ;;  %s708_s25 = scalar_lea.hbm %s1697_s2, 3840 }
 0x118   : > { %p705_p4 = scmp.ne.s32.totalorder %s1644_s8, %s704_s22  ;;  %p709_p9 = scmp.lt.u32.totalorder %s1644_s8, %s1697_s2 }
 0x119   : > { %p710_p10 = scmp.lt.u32.totalorder %s708_s25, %s704_s22  ;;  %p712_p12 = scmp.lt.u32.totalorder %s704_s22, %s1644_s8 }
 0x11a   : > { %p706_p7 = pnand %p705_p4, %p812_p5 }
 0x11b   : > { %p711_p11 = por %p710_p10, %p709_p9 }
 0x11c   : > { %p707_p8 = pneg %p706_p7 }
 0x11d   : > { %p713_p13 = por %p712_p12, %p711_p11 }
 0x11f   : > { %p714_p0 = pnand %p713_p13, %p707_p8 }
 0x121   : > { %717 = shalt.err (!%p714_p0)
}
 0x122   : > { %s757_s28 = smov 384   ;;  %s758_s29 = smov 24  }
 0x123   : > { %645 = dma.vmem_to_hbm [thread:$0]  (%p812_p5), %s1646_s5, 768, %s1644_s8, %s1654_s13, %s757_s28, %s757_s28, %s758_s29  }
 0x124 PF: > { %p651_p1 = scmp.ge.s32.totalorder %s752_s12, 2  ;;  %s584_s30 = sand.u32 1, %s740_s9  }
 0x125   : > { %s585_s3 = scalar_lea.sflag [#allocation3], %s584_s30 }
 0x126   : > { %p648_p2 = pnand %p651_p1, %p816_p6 }
 0x128   : > { %735 = dma.done.wait (!%p648_p2), %s585_s3, 768  }
 0x129   : > { %737 = vsyncadd (!%p648_p2), %s585_s3, 4294966528  ;;  %p12_p3 = scmp.ge.s32.totalorder %s799_s15, 7   ;;  %s1992_s9 = smov %s744_s10 }
 0x12a   : > { %s1993_s10 = smov %s748_s11  ;;  %s1994_s11 = smov %s810_s18 }
 0x12b   : > { %s1995_s12 = smov %s799_s15  ;;  %14 = sbr.rel (!%p12_p3) target bundleno = 3 (0x3), region = 63 }
 0x132   :  { %590 = vsyncpa [#allocation3], 1 }
 0x133   :  { %592 = vsyncpa [#allocation3 + $0x1], 1 }

// kernel: squeeze.4
= control target key start
LH: loop header
LB: loop body
LE: loop exit
PB: predicated region body
PF: predicated region fallthrough
CT: control target
= control target key end

     0   :  { %vm514_vm0 = vcmask 523264   ;;  %vm595_vm1 = vcmask 1048064   ;;  %s1194_s0 = inlined_call_operand.vmem [shape: bf16[1,256,64], index: 0, kind: input, shape index: {}]   ;;  %s1195_s1 = inlined_call_operand.vmem [shape: bf16[128,128], index: 1, kind: output, shape index: {}]  }
   0x1   :  { %v1019_v0 = vld [vmem:[%s1194_s0 + $0x20] sm:$0xff]   ;;  %v1018_v2 = vld [vmem:[%s1194_s0 + $0x28] sm:$0xff]   ;;  %v1017_v16 = vld [vmem:[%s1194_s0 + $0x30] sm:$0xff]  }
   0x2   :  { %v965_v1 = vld [vmem:[%s1194_s0] sm:$0xff]   ;;  %v950_v3 = vunpack.c.l.bf16 %v1019_v0  ;;  %v951_v4 = vunpack.c.h.bf16 %v1019_v0  ;;  %v1022_v7 = vld [vmem:[%s1194_s0 + $0x8] sm:$0xff]   ;;  %v946_v10 = vunpack.c.l.bf16 %v1018_v2  ;;  %v947_v11 = vunpack.c.h.bf16 %v1018_v2  ;;  %v1021_v21 = vld [vmem:[%s1194_s0 + $0x10] sm:$0xff]  }
   0x3   :  { %v966_v5 = vunpack.c.l.bf16 %v965_v1  ;;  %v967_v6 = vunpack.c.h.bf16 %v965_v1  ;;  %v1011_v8 = vld [vmem:[%s1194_s0 + $0x60] sm:$0xff]   ;;  %v962_v12 = vunpack.c.l.bf16 %v1022_v7  ;;  %v963_v13 = vunpack.c.h.bf16 %v1022_v7  ;;  %v1010_v14 = vld [vmem:[%s1194_s0 + $0x68] sm:$0xff]   ;;  %v1009_v22 = vld [vmem:[%s1194_s0 + $0x70] sm:$0xff]  }
   0x4   :  { %v1015_v9 = vld [vmem:[%s1194_s0 + $0x40] sm:$0xff]   ;;  %v1014_v15 = vld [vmem:[%s1194_s0 + $0x48] sm:$0xff]   ;;  %372 = vst [vmem:[#allocation1 + $0x48] sm:$0xff] %v951_v4  ;;  %388 = vst [vmem:[#allocation1 + $0x40] sm:$0xff] %v950_v3  ;;  %v918_v17 = vunpack.c.l.bf16 %v1011_v8  ;;  %v919_v18 = vunpack.c.h.bf16 %v1011_v8  ;;  %v914_v24 = vunpack.c.l.bf16 %v1010_v14  ;;  %v915_v25 = vunpack.c.h.bf16 %v1010_v14 }
   0x5   :  { %499 = vst [vmem:[#allocation1 + $0x8] sm:$0xff] %v967_v6  ;;  %512 = vst [vmem:[#allocation1] sm:$0xff] %v966_v5  ;;  %v934_v19 = vunpack.c.l.bf16 %v1015_v9  ;;  %v935_v20 = vunpack.c.h.bf16 %v1015_v9  ;;  %v1013_v23 = vld [vmem:[%s1194_s0 + $0x50] sm:$0xff]   ;;  %v930_v26 = vunpack.c.l.bf16 %v1014_v15  ;;  %v931_v27 = vunpack.c.h.bf16 %v1014_v15  ;;  %v1016_v28 = vld [vmem:[%s1194_s0 + $0x38] sm:$0xff]  }
   0x6   :  { %340 = vst [vmem:[#allocation1 + $0x58] sm:$0xff] %v947_v11  ;;  %356 = vst [vmem:[#allocation1 + $0x50] sm:$0xff] %v946_v10  ;;  %v1020_v29 = vld [vmem:[%s1194_s0 + $0x18] sm:$0xff]   ;;  %v942_v30 = vunpack.c.l.bf16 %v1017_v16  ;;  %v943_v31 = vunpack.c.h.bf16 %v1017_v16  ;;  %v958_v32 = vunpack.c.l.bf16 %v1021_v21  ;;  %v959_v33 = vunpack.c.h.bf16 %v1021_v21 }
   0x7   :  { %468 = vst [vmem:[#allocation1 + $0x18] sm:$0xff] %v963_v13  ;;  %484 = vst [vmem:[#allocation1 + $0x10] sm:$0xff] %v962_v12  ;;  %v1008_v34 = vld [vmem:[%s1194_s0 + $0x78] sm:$0xff]   ;;  %v910_v36 = vunpack.c.l.bf16 %v1009_v22  ;;  %v911_v37 = vunpack.c.h.bf16 %v1009_v22  ;;  %v926_v38 = vunpack.c.l.bf16 %v1013_v23  ;;  %v927_v39 = vunpack.c.h.bf16 %v1013_v23 }
   0x8   :  { %116 = vst [vmem:[#allocation1 + $0xc8] sm:$0xff] %v919_v18  ;;  %132 = vst [vmem:[#allocation1 + $0xc0] sm:$0xff] %v918_v17  ;;  %v1012_v35 = vld [vmem:[%s1194_s0 + $0x58] sm:$0xff]   ;;  %v938_v40 = vunpack.c.l.bf16 %v1016_v28  ;;  %v939_v41 = vunpack.c.h.bf16 %v1016_v28  ;;  %v954_v42 = vunpack.c.l.bf16 %v1020_v29  ;;  %v955_v43 = vunpack.c.h.bf16 %v1020_v29  ;;  %s1071_s0 = smov 64  }
   0x9   :  { %244 = vst [vmem:[#allocation1 + $0x88] sm:$0xff] %v935_v20  ;;  %260 = vst [vmem:[#allocation1 + $0x80] sm:$0xff] %v934_v19  ;;  %v906_v44 = vunpack.c.l.bf16 %v1008_v34  ;;  %v907_v45 = vunpack.c.h.bf16 %v1008_v34  ;;  %v922_v46 = vunpack.c.l.bf16 %v1012_v35  ;;  %v923_v47 = vunpack.c.h.bf16 %v1012_v35 }
   0xa   :  { %84 = vst [vmem:[#allocation1 + $0xd8] sm:$0xff] %v915_v25  ;;  %100 = vst [vmem:[#allocation1 + $0xd0] sm:$0xff] %v914_v24 }
   0xb   :  { %212 = vst [vmem:[#allocation1 + $0x98] sm:$0xff] %v931_v27  ;;  %228 = vst [vmem:[#allocation1 + $0x90] sm:$0xff] %v930_v26  ;;  %v598_v50 = vld [vmem:[#allocation1 + $0x41] ss:$2 sm:$0xff]   ;;  %v532_v52 = vld [vmem:[#allocation1 + $0x40] ss:$2 sm:$0xff]  }
   0xc   :  { %308 = vst [vmem:[#allocation1 + $0x68] sm:$0xff] %v943_v31  ;;  %324 = vst [vmem:[#allocation1 + $0x60] sm:$0xff] %v942_v30  ;;  %v513_v48 = vld [vmem:[#allocation1] ss:$2 sm:$0xff]   ;;  %v592_v49 = vld [vmem:[#allocation1 + $0x1] ss:$2 sm:$0xff]  }
   0xd   :  { %436 = vst [vmem:[#allocation1 + $0x28] sm:$0xff] %v959_v33  ;;  %452 = vst [vmem:[#allocation1 + $0x20] sm:$0xff] %v958_v32  ;;  %v1031_v51 = vpack.i.bf16 %v598_v50, %v592_v49  ;;  %v626_v55 = vld [vmem:[#allocation1 + $0x51] ss:$2 sm:$0xff]   ;;  %v537_v56 = vld [vmem:[#allocation1 + $0x50] ss:$2 sm:$0xff]  }
   0xe   :  { %52 = vst [vmem:[#allocation1 + $0xe8] sm:$0xff] %v911_v37  ;;  %68 = vst [vmem:[#allocation1 + $0xe0] sm:$0xff] %v910_v36  ;;  %v517_v53 = vld [vmem:[#allocation1 + $0x10] ss:$2 sm:$0xff]   ;;  %v619_v54 = vld [vmem:[#allocation1 + $0x11] ss:$2 sm:$0xff]  }
   0xf   :  { %180 = vst [vmem:[#allocation1 + $0xa8] sm:$0xff] %v927_v39  ;;  %196 = vst [vmem:[#allocation1 + $0xa0] sm:$0xff] %v926_v38  ;;  %1032 = vrot.lane.b32.xlu0 %v1031_v51, %s1071_s0  ;;  %v1041_v58 = vpack.i.bf16 %v626_v55, %v619_v54  ;;  %v612_v59 = vld [vmem:[#allocation1 + $0xc1] ss:$2 sm:$0xff]   ;;  %v572_v3 = vld [vmem:[#allocation1 + $0xc0] ss:$2 sm:$0xff]  }
  0x10   :  { %276 = vst [vmem:[#allocation1 + $0x78] sm:$0xff] %v939_v41  ;;  %292 = vst [vmem:[#allocation1 + $0x70] sm:$0xff] %v938_v40  ;;  %v605_v57 = vld [vmem:[#allocation1 + $0x81] ss:$2 sm:$0xff]   ;;  %v552_v1 = vld [vmem:[#allocation1 + $0x80] ss:$2 sm:$0xff]  }
  0x11   :  { %404 = vst [vmem:[#allocation1 + $0x38] sm:$0xff] %v955_v43  ;;  %420 = vst [vmem:[#allocation1 + $0x30] sm:$0xff] %v954_v42  ;;  %v640_v61 = vld [vmem:[#allocation1 + $0xd1] ss:$2 sm:$0xff]   ;;  %v1036_v62 = vpack.i.bf16 %v612_v59, %v605_v57  ;;  %1042 = vrot.lane.b32.xlu1 %v1041_v58, %s1071_s0  ;;  %v577_v10 = vld [vmem:[#allocation1 + $0xd0] ss:$2 sm:$0xff]  }
  0x12   :  { %20 = vst [vmem:[#allocation1 + $0xf8] sm:$0xff] %v907_v45  ;;  %36 = vst [vmem:[#allocation1 + $0xf0] sm:$0xff] %v906_v44  ;;  %v633_v60 = vld [vmem:[#allocation1 + $0x91] ss:$2 sm:$0xff]   ;;  %v557_v6 = vld [vmem:[#allocation1 + $0x90] ss:$2 sm:$0xff]  }
  0x13   :  { %148 = vst [vmem:[#allocation1 + $0xb8] sm:$0xff] %v923_v47  ;;  %164 = vst [vmem:[#allocation1 + $0xb0] sm:$0xff] %v922_v46  ;;  %v654_v0 = vld [vmem:[#allocation1 + $0x61] ss:$2 sm:$0xff]   ;;  %v1046_v2 = vpack.i.bf16 %v640_v61, %v633_v60  ;;  %1037 = vrot.lane.b32.xlu0 %v1036_v62, %s1071_s0  ;;  %v542_v13 = vld [vmem:[#allocation1 + $0x60] ss:$2 sm:$0xff]  }
  0x14   :  { %515 = vst.msk [vmem:[#allocation0] sm:$0xff] %vm514_vm0, %v513_v48   ;;  %535 = vst.msk [vmem:[#allocation0 + $0x20] sm:$0xff] %vm514_vm0, %v532_v52   ;;  %v647_v63 = vld [vmem:[#allocation1 + $0x21] ss:$2 sm:$0xff]   ;;  %v522_v12 = vld [vmem:[#allocation1 + $0x20] ss:$2 sm:$0xff]  }
  0x15   :  { %520 = vst.msk [vmem:[#allocation0 + $0x8] sm:$0xff] %vm514_vm0, %v517_v53   ;;  %540 = vst.msk [vmem:[#allocation0 + $0x28] sm:$0xff] %vm514_vm0, %v537_v56   ;;  %v668_v5 = vld [vmem:[#allocation1 + $0xe1] ss:$2 sm:$0xff]   ;;  %v1051_v7 = vpack.i.bf16 %v654_v0, %v647_v63  ;;  %1047 = vrot.lane.b32.xlu1 %v1046_v2, %s1071_s0  ;;  %v582_v16 = vld [vmem:[#allocation1 + $0xe0] ss:$2 sm:$0xff]  }
  0x16   :  { %555 = vst.msk [vmem:[#allocation0 + $0x40] sm:$0xff] %vm514_vm0, %v552_v1   ;;  %v661_v4 = vld [vmem:[#allocation1 + $0xa1] ss:$2 sm:$0xff]   ;;  %575 = vst.msk [vmem:[#allocation0 + $0x60] sm:$0xff] %vm514_vm0, %v572_v3   ;;  %v562_v14 = vld [vmem:[#allocation1 + $0xa0] ss:$2 sm:$0xff]  }
  0x17   :  { %v682_v9 = vld [vmem:[#allocation1 + $0x71] ss:$2 sm:$0xff]   ;;  %560 = vst.msk [vmem:[#allocation0 + $0x48] sm:$0xff] %vm514_vm0, %v557_v6   ;;  %580 = vst.msk [vmem:[#allocation0 + $0x68] sm:$0xff] %vm514_vm0, %v577_v10   ;;  %v1056_v15 = vpack.i.bf16 %v668_v5, %v661_v4  ;;  %v547_v18 = vld [vmem:[#allocation1 + $0x70] ss:$2 sm:$0xff]   ;;  %1052 = vrot.lane.b32.xlu0 %v1051_v7, %s1071_s0 }
  0x18   :  { %v675_v8 = vld [vmem:[#allocation1 + $0x31] ss:$2 sm:$0xff]   ;;  %525 = vst.msk [vmem:[#allocation0 + $0x10] sm:$0xff] %vm514_vm0, %v522_v12   ;;  %545 = vst.msk [vmem:[#allocation0 + $0x30] sm:$0xff] %vm514_vm0, %v542_v13   ;;  %v527_v17 = vld [vmem:[#allocation1 + $0x30] ss:$2 sm:$0xff]  }
  0x19   :  { %565 = vst.msk [vmem:[#allocation0 + $0x50] sm:$0xff] %vm514_vm0, %v562_v14   ;;  %v696_v19 = vld [vmem:[#allocation1 + $0xf1] ss:$2 sm:$0xff]   ;;  %585 = vst.msk [vmem:[#allocation0 + $0x70] sm:$0xff] %vm514_vm0, %v582_v16   ;;  %v587_v21 = vld [vmem:[#allocation1 + $0xf0] ss:$2 sm:$0xff]   ;;  %v1061_v22 = vpack.i.bf16 %v682_v9, %v675_v8  ;;  %1057 = vrot.lane.b32.xlu1 %v1056_v15, %s1071_s0 }
  0x1a   :  { %v689_v11 = vld [vmem:[#allocation1 + $0xb1] ss:$2 sm:$0xff]   ;;  %530 = vst.msk [vmem:[#allocation0 + $0x18] sm:$0xff] %vm514_vm0, %v527_v17   ;;  %550 = vst.msk [vmem:[#allocation0 + $0x38] sm:$0xff] %vm514_vm0, %v547_v18   ;;  %v567_v20 = vld [vmem:[#allocation1 + $0xb0] ss:$2 sm:$0xff]  }
  0x1b   :  { %570 = vst.msk [vmem:[#allocation0 + $0x58] sm:$0xff] %vm514_vm0, %v567_v20   ;;  %590 = vst.msk [vmem:[#allocation0 + $0x78] sm:$0xff] %vm514_vm0, %v587_v21   ;;  %v1066_v23 = vpack.i.bf16 %v696_v19, %v689_v11  ;;  %1062 = vrot.lane.b32.xlu0 %v1061_v22, %s1071_s0 }
  0x1d   :  { %1067 = vrot.lane.b32.xlu1 %v1066_v23, %s1071_s0 }
  0x81   :  { %v1033_v24 = vpop.permute.xlu0 %1032 }
  0x82   :  { %v1035_v25 = vunpack.i.h.bf16 %v1033_v24  ;;  %v1034_v26 = vunpack.i.l.bf16 %v1033_v24 }
  0x83   :  { %v1043_v27 = vpop.permute.xlu1 %1042 }
  0x84   :  { %596 = vst.msk [vmem:[#allocation0] sm:$0xff] %vm595_vm1, %v1034_v26   ;;  %603 = vst.msk [vmem:[#allocation0 + $0x20] sm:$0xff] %vm595_vm1, %v1035_v25   ;;  %v1045_v28 = vunpack.i.h.bf16 %v1043_v27  ;;  %v1044_v29 = vunpack.i.l.bf16 %v1043_v27 }
  0x85   :  { %v1038_v30 = vpop.permute.xlu0 %1037 }
  0x86   :  { %624 = vst.msk [vmem:[#allocation0 + $0x8] sm:$0xff] %vm595_vm1, %v1044_v29   ;;  %631 = vst.msk [vmem:[#allocation0 + $0x28] sm:$0xff] %vm595_vm1, %v1045_v28   ;;  %v1040_v31 = vunpack.i.h.bf16 %v1038_v30  ;;  %v1039_v32 = vunpack.i.l.bf16 %v1038_v30 }
  0x87   :  { %v1048_v33 = vpop.permute.xlu1 %1047 }
  0x88   :  { %610 = vst.msk [vmem:[#allocation0 + $0x40] sm:$0xff] %vm595_vm1, %v1039_v32   ;;  %617 = vst.msk [vmem:[#allocation0 + $0x60] sm:$0xff] %vm595_vm1, %v1040_v31   ;;  %v1050_v34 = vunpack.i.h.bf16 %v1048_v33  ;;  %v1049_v35 = vunpack.i.l.bf16 %v1048_v33 }
  0x89   :  { %v1053_v36 = vpop.permute.xlu0 %1052 }
  0x8a   :  { %638 = vst.msk [vmem:[#allocation0 + $0x48] sm:$0xff] %vm595_vm1, %v1049_v35   ;;  %645 = vst.msk [vmem:[#allocation0 + $0x68] sm:$0xff] %vm595_vm1, %v1050_v34   ;;  %v1055_v37 = vunpack.i.h.bf16 %v1053_v36  ;;  %v1054_v38 = vunpack.i.l.bf16 %v1053_v36 }
  0x8b   :  { %v706_v39 = vld [vmem:[#allocation0] sm:$0xff]  ;;  %v1058_v41 = vpop.permute.xlu1 %1057 }
  0x8c   :  { %v731_v40 = vld [vmem:[#allocation0 + $0x20] sm:$0xff]  ;;  %659 = vst.msk [vmem:[#allocation0 + $0x30] sm:$0xff] %vm595_vm1, %v1055_v37   ;;  %652 = vst.msk [vmem:[#allocation0 + $0x10] sm:$0xff] %vm595_vm1, %v1054_v38   ;;  %v1060_v42 = vunpack.i.h.bf16 %v1058_v41  ;;  %v1059_v43 = vunpack.i.l.bf16 %v1058_v41 }
  0x8d   :  { %v711_v44 = vld [vmem:[#allocation0 + $0x8] sm:$0xff]  ;;  %v1063_v46 = vpop.permute.xlu0 %1062 }
  0x8e   :  { %v738_v45 = vld [vmem:[#allocation0 + $0x28] sm:$0xff]  ;;  %v971_v47 = vpack.c.bf16 %v711_v44, %v706_v39  ;;  %666 = vst.msk [vmem:[#allocation0 + $0x50] sm:$0xff] %vm595_vm1, %v1059_v43   ;;  %673 = vst.msk [vmem:[#allocation0 + $0x70] sm:$0xff] %vm595_vm1, %v1060_v42   ;;  %v1065_v49 = vunpack.i.h.bf16 %v1063_v46  ;;  %v1064_v50 = vunpack.i.l.bf16 %v1063_v46 }
  0x8f   :  { %v981_v48 = vpack.c.bf16 %v738_v45, %v731_v40  ;;  %v759_v51 = vld [vmem:[#allocation0 + $0x40] sm:$0xff]  ;;  %v1068_v53 = vpop.permute.xlu1 %1067 }
  0x90   :  { %v787_v52 = vld [vmem:[#allocation0 + $0x60] sm:$0xff]  ;;  %972 = vst [vmem:[%s1195_s1] sm:$0xff] %v971_v47   ;;  %687 = vst.msk [vmem:[#allocation0 + $0x38] sm:$0xff] %vm595_vm1, %v1065_v49   ;;  %v1070_v54 = vunpack.i.h.bf16 %v1068_v53  ;;  %v1069_v55 = vunpack.i.l.bf16 %v1068_v53 }
  0x91   :  { %1024 = vst [vmem:[%s1195_s1 + $0x10] sm:$0xff] %v981_v48   ;;  %680 = vst.msk [vmem:[#allocation0 + $0x18] sm:$0xff] %vm595_vm1, %v1064_v50   ;;  %v766_v56 = vld [vmem:[#allocation0 + $0x48] sm:$0xff] }
  0x92   :  { %v794_v57 = vld [vmem:[#allocation0 + $0x68] sm:$0xff]  ;;  %v991_v58 = vpack.c.bf16 %v766_v56, %v759_v51  ;;  %694 = vst.msk [vmem:[#allocation0 + $0x58] sm:$0xff] %vm595_vm1, %v1069_v55   ;;  %701 = vst.msk [vmem:[#allocation0 + $0x78] sm:$0xff] %vm595_vm1, %v1070_v54  }
  0x93   :  { %v1001_v59 = vpack.c.bf16 %v794_v57, %v787_v52  ;;  %v745_v60 = vld [vmem:[#allocation0 + $0x30] sm:$0xff] }
  0x94   :  { %1026 = vst [vmem:[%s1195_s1 + $0x20] sm:$0xff] %v991_v58   ;;  %v717_v61 = vld [vmem:[#allocation0 + $0x10] sm:$0xff] }
  0x95   :  { %1028 = vst [vmem:[%s1195_s1 + $0x30] sm:$0xff] %v1001_v59   ;;  %v773_v0 = vld [vmem:[#allocation0 + $0x50] sm:$0xff] }
  0x96   :  { %v801_v3 = vld [vmem:[#allocation0 + $0x70] sm:$0xff] }
  0x97   :  { %v752_v62 = vld [vmem:[#allocation0 + $0x38] sm:$0xff] }
  0x98   :  { %v724_v63 = vld [vmem:[#allocation0 + $0x18] sm:$0xff]  ;;  %v986_v2 = vpack.c.bf16 %v752_v62, %v745_v60 }
  0x99   :  { %v976_v1 = vpack.c.bf16 %v724_v63, %v717_v61  ;;  %v780_v4 = vld [vmem:[#allocation0 + $0x58] sm:$0xff] }
  0x9a   :  { %v808_v5 = vld [vmem:[#allocation0 + $0x78] sm:$0xff]  ;;  %1025 = vst [vmem:[%s1195_s1 + $0x18] sm:$0xff] %v986_v2   ;;  %v996_v6 = vpack.c.bf16 %v780_v4, %v773_v0 }
  0x9b   :  { %1023 = vst [vmem:[%s1195_s1 + $0x8] sm:$0xff] %v976_v1   ;;  %v1006_v7 = vpack.c.bf16 %v808_v5, %v801_v3 }
  0x9c   :  { %1027 = vst [vmem:[%s1195_s1 + $0x28] sm:$0xff] %v996_v6  }
  0x9d   :  { %1029 = vst [vmem:[%s1195_s1 + $0x38] sm:$0xff] %v1006_v7  }

// kernel: run.7
= control target key start
LH: loop header
LB: loop body
LE: loop exit
PB: predicated region body
PF: predicated region fallthrough
CT: control target
= control target key end

     0   :  { %s414_s0 = inlined_call_operand.vmem [shape: bf16[128,128], index: 0, kind: input, shape index: {}, may-alias: {0,3}]   ;;  %s415_s1 = inlined_call_operand.vmem [shape: bf16[128,128], index: 1, kind: input, shape index: {}]   ;;  %s416_s2 = inlined_call_operand.vmem [shape: s8[128,128], index: 2, kind: input, shape index: {}]   ;;  %s417_s3 = inlined_call_operand.vmem [shape: bf16[128,128], index: 3, kind: output, shape index: {}, may-alias: {0,3}]  }
   0x1   :  { %v14_v0 = vld [vmem:[%s416_s2] sm:$0xff]  ;;  %v52_v9 = vld [vmem:[%s415_s1 + $0x8] sm:$0xf]  ;;  %v16_v14 = vld [vmem:[%s416_s2 + $0x10] sm:$0xff] }
   0x2   :  { %v18_v1 = vunpack.c.0.s8 %v14_v0  ;;  %v50_v2 = vld [vmem:[%s415_s1] sm:$0xf]  ;;  %v19_v4 = vunpack.c.1.s8 %v14_v0  ;;  %v20_v5 = vunpack.c.2.s8 %v14_v0  ;;  %v21_v6 = vunpack.c.3.s8 %v14_v0  ;;  %v51_v7 = vld [vmem:[%s415_s1 + $0x4] sm:$0xf]  ;;  %v15_v13 = vld [vmem:[%s416_s2 + $0x8] sm:$0xff] }
   0x3   :  { %v66_v3 = vld [vmem:[%s414_s0] sm:$0xf]  ;;  %v67_v8 = vld [vmem:[%s414_s0 + $0x4] sm:$0xf]  ;;  %v68_v15 = vld [vmem:[%s414_s0 + $0x8] sm:$0xf]  ;;  %v22_v17 = vunpack.c.0.s8 %v15_v13  ;;  %v23_v18 = vunpack.c.1.s8 %v15_v13  ;;  %v24_v19 = vunpack.c.2.s8 %v15_v13  ;;  %v25_v20 = vunpack.c.3.s8 %v15_v13 }
   0x4   :  { %vm34_vm0 = vcmp.gt.s32.totalorder %v18_v1, 0  ;;  %vm172_vm1 = vcmp.gt.s32.totalorder %v19_v4, 0  ;;  %vm176_vm2 = vcmp.gt.s32.totalorder %v20_v5, 0  ;;  %vm180_vm3 = vcmp.gt.s32.totalorder %v21_v6, 0  ;;  %v53_v16 = vld [vmem:[%s415_s1 + $0xc] sm:$0xf] }
   0x5   :  { %vm82_vm4 = vmpackc.low %vm34_vm0, %vm34_vm0  ;;  %v69_v22 = vld [vmem:[%s414_s0 + $0xc] sm:$0xf]  ;;  %v54_v23 = vld [vmem:[%s415_s1 + $0x10] sm:$0xf]  ;;  %v26_v24 = vunpack.c.0.s8 %v16_v14  ;;  %vm211_vm7 = vcmp.gt.s32.totalorder %v22_v17, 0  ;;  %vm218_vm8 = vcmp.gt.s32.totalorder %v23_v18, 0  ;;  %v27_v29 = vunpack.c.1.s8 %v16_v14 }
   0x6   :  { %v98_v21 = vsel %vm82_vm4, %v50_v2, %v66_v3  ;;  %vm83_vm5 = vmpackc.low %vm172_vm1, %vm172_vm1  ;;  %v225_v30 = vld [vmem:[%s416_s2 + $0x18] sm:$0xff]  ;;  %v55_v32 = vld [vmem:[%s415_s1 + $0x14] sm:$0xf]  ;;  %vm239_vm10 = vcmp.gt.s32.totalorder %v24_v19, 0  ;;  %v28_v35 = vunpack.c.2.s8 %v16_v14  ;;  %vm255_vm12 = vcmp.gt.s32.totalorder %v25_v20, 0 }
   0x7   :  { %114 = vst [vmem:[%s417_s3] sm:$0xf] %v98_v21  ;;  %v99_v25 = vsel %vm83_vm5, %v51_v7, %v67_v8  ;;  %vm84_vm6 = vmpackc.low %vm176_vm2, %vm176_vm2  ;;  %v56_v37 = vld [vmem:[%s415_s1 + $0x18] sm:$0xf]  ;;  %v29_v40 = vunpack.c.3.s8 %v16_v14  ;;  %v57_v42 = vld [vmem:[%s415_s1 + $0x1c] sm:$0xf]  ;;  %vm271_vm14 = vcmp.gt.s32.totalorder %v26_v24, 0  ;;  %v30_v45 = vunpack.c.0.s8 %v225_v30 }
   0x8   :  { %v100_v31 = vsel %vm84_vm6, %v52_v9, %v68_v15  ;;  %vm85_vm9 = vmpackc.low %vm180_vm3, %vm180_vm3  ;;  %v58_v47 = vld [vmem:[%s415_s1 + $0x20] sm:$0xf]  ;;  %vm288_vm0 = vcmp.gt.s32.totalorder %v27_v29, 0  ;;  %v31_v50 = vunpack.c.1.s8 %v225_v30  ;;  %v59_v52 = vld [vmem:[%s415_s1 + $0x24] sm:$0xf]  ;;  %vm305_vm2 = vcmp.gt.s32.totalorder %v28_v35, 0 }
   0x9   :  { %v101_v36 = vsel %vm85_vm9, %v53_v16, %v69_v22  ;;  %vm86_vm11 = vmpackc.low %vm211_vm7, %vm211_vm7  ;;  %v32_v55 = vunpack.c.2.s8 %v225_v30  ;;  %v60_v57 = vld [vmem:[%s415_s1 + $0x28] sm:$0xf]  ;;  %vm322_vm4 = vcmp.gt.s32.totalorder %v29_v40, 0  ;;  %v33_v60 = vunpack.c.3.s8 %v225_v30  ;;  %v61_v62 = vld [vmem:[%s415_s1 + $0x2c] sm:$0xf] }
   0xa   :  { %vm87_vm13 = vmpackc.low %vm218_vm8, %vm218_vm8  ;;  %vm339_vm6 = vcmp.gt.s32.totalorder %v30_v45, 0  ;;  %v62_v2 = vld [vmem:[%s415_s1 + $0x30] sm:$0xf]  ;;  %vm355_vm8 = vcmp.gt.s32.totalorder %v31_v50, 0  ;;  %v63_v6 = vld [vmem:[%s415_s1 + $0x34] sm:$0xf] }
   0xb   :  { %vm88_vm15 = vmpackc.low %vm239_vm10, %vm239_vm10  ;;  %vm371_vm10 = vcmp.gt.s32.totalorder %v32_v55, 0  ;;  %v64_v10 = vld [vmem:[%s415_s1 + $0x38] sm:$0xf]  ;;  %v65_v13 = vld [vmem:[%s415_s1 + $0x3c] sm:$0xf] }
   0xc   :  { %vm89_vm1 = vmpackc.low %vm255_vm12, %vm255_vm12  ;;  %vm49_vm12 = vcmp.gt.s32.totalorder %v33_v60, 0 }
   0xd   :  { %vm90_vm3 = vmpackc.low %vm271_vm14, %vm271_vm14 }
   0xe   :  { %v70_v27 = vld [vmem:[%s414_s0 + $0x10] sm:$0xf]  ;;  %vm91_vm5 = vmpackc.low %vm288_vm0, %vm288_vm0 }
   0xf   :  { %115 = vst [vmem:[%s417_s3 + $0x4] sm:$0xf] %v99_v25  ;;  %v102_v41 = vsel %vm86_vm11, %v54_v23, %v70_v27  ;;  %vm92_vm7 = vmpackc.low %vm305_vm2, %vm305_vm2 }
  0x10   :  { %vm93_vm9 = vmpackc.low %vm322_vm4, %vm322_vm4 }
  0x11   :  { %vm94_vm11 = vmpackc.low %vm339_vm6, %vm339_vm6 }
  0x12   :  { %vm96_vm14 = vmpackc.low %vm371_vm10, %vm371_vm10 }
  0x16   :  { %v71_v33 = vld [vmem:[%s414_s0 + $0x14] sm:$0xf] }
  0x17   :  { %116 = vst [vmem:[%s417_s3 + $0x8] sm:$0xf] %v100_v31  ;;  %v103_v46 = vsel %vm87_vm13, %v55_v32, %v71_v33  ;;  %vm95_vm13 = vmpackc.low %vm355_vm8, %vm355_vm8 }
  0x1e   :  { %v72_v38 = vld [vmem:[%s414_s0 + $0x18] sm:$0xf] }
  0x1f   :  { %117 = vst [vmem:[%s417_s3 + $0xc] sm:$0xf] %v101_v36  ;;  %v104_v51 = vsel %vm88_vm15, %v56_v37, %v72_v38  ;;  %vm97_vm15 = vmpackc.low %vm49_vm12, %vm49_vm12 }
  0x26   :  { %v73_v43 = vld [vmem:[%s414_s0 + $0x1c] sm:$0xf] }
  0x27   :  { %118 = vst [vmem:[%s417_s3 + $0x10] sm:$0xf] %v102_v41  ;;  %v105_v56 = vsel %vm89_vm1, %v57_v42, %v73_v43 }
  0x2e   :  { %v74_v48 = vld [vmem:[%s414_s0 + $0x20] sm:$0xf] }
  0x2f   :  { %119 = vst [vmem:[%s417_s3 + $0x14] sm:$0xf] %v103_v46  ;;  %v106_v61 = vsel %vm90_vm3, %v58_v47, %v74_v48 }
  0x36   :  { %v75_v53 = vld [vmem:[%s414_s0 + $0x24] sm:$0xf] }
  0x37   :  { %120 = vst [vmem:[%s417_s3 + $0x18] sm:$0xf] %v104_v51  ;;  %v107_v1 = vsel %vm91_vm5, %v59_v52, %v75_v53 }
  0x3e   :  { %v76_v58 = vld [vmem:[%s414_s0 + $0x28] sm:$0xf] }
  0x3f   :  { %121 = vst [vmem:[%s417_s3 + $0x1c] sm:$0xf] %v105_v56  ;;  %v108_v5 = vsel %vm92_vm7, %v60_v57, %v76_v58 }
  0x46   :  { %v77_v63 = vld [vmem:[%s414_s0 + $0x2c] sm:$0xf] }
  0x47   :  { %122 = vst [vmem:[%s417_s3 + $0x20] sm:$0xf] %v106_v61  ;;  %v109_v9 = vsel %vm93_vm9, %v61_v62, %v77_v63 }
  0x4e   :  { %v78_v3 = vld [vmem:[%s414_s0 + $0x30] sm:$0xf] }
  0x4f   :  { %123 = vst [vmem:[%s417_s3 + $0x24] sm:$0xf] %v107_v1  ;;  %v110_v12 = vsel %vm94_vm11, %v62_v2, %v78_v3 }
  0x56   :  { %v79_v7 = vld [vmem:[%s414_s0 + $0x34] sm:$0xf] }
  0x57   :  { %124 = vst [vmem:[%s417_s3 + $0x28] sm:$0xf] %v108_v5  ;;  %v111_v15 = vsel %vm95_vm13, %v63_v6, %v79_v7 }
  0x5e   :  { %v80_v11 = vld [vmem:[%s414_s0 + $0x38] sm:$0xf] }
  0x5f   :  { %125 = vst [vmem:[%s417_s3 + $0x2c] sm:$0xf] %v109_v9  ;;  %v112_v16 = vsel %vm96_vm14, %v64_v10, %v80_v11 }
  0x66   :  { %v81_v14 = vld [vmem:[%s414_s0 + $0x3c] sm:$0xf] }
  0x67   :  { %126 = vst [vmem:[%s417_s3 + $0x30] sm:$0xf] %v110_v12  ;;  %127 = vst [vmem:[%s417_s3 + $0x34] sm:$0xf] %v111_v15  ;;  %v113_v17 = vsel %vm97_vm15, %v65_v13, %v81_v14 }
  0x68   :  { %128 = vst [vmem:[%s417_s3 + $0x38] sm:$0xf] %v112_v16  ;;  %129 = vst [vmem:[%s417_s3 + $0x3c] sm:$0xf] %v113_v17 }

// kernel: run.6
= control target key start
LH: loop header
LB: loop body
LE: loop exit
PB: predicated region body
PF: predicated region fallthrough
CT: control target
= control target key end

     0   :  { %v8_v0 = vlaneseq  ;;  %v83_v4 = vmov 1966171168   ;;  %vm84_vm1 = vmmov 1   ;;  %v85_v6 = vmov 0   ;;  %s103_s0 = inlined_call_operand.vmem [shape: f32[1,320], index: 0, kind: input, shape index: {}]   ;;  %s104_s1 = inlined_call_operand.vmem [shape: f32[1,320], index: 1, kind: output, shape index: {}]  }
   0x1   :  { %v15_v1 = vld [vmem:[%s103_s0] sm:$0x7]  ;;  %v48_v5 = vunpack.c.l.s4 %v83_v4  ;;  %v86_v16 = vmov 0.0  }
   0x2   :  { %v9_v2 = vand.u32 127, %v8_v0  ;;  %vm16_vm0 = vcmp.gt.f32.partialorder %v15_v1, 0.5  ;;  %v23_v3 = vshrl.u32 %v8_v0, 7  ;;  %vm72_vm9 = vcmp.lt.s32.totalorder %v8_v0, 320 }
   0x3   :  { %vm20_vm2 = vmxor %vm16_vm0, %vm84_vm1  ;;  %v49_v11 = vunpack.c.0.s8 %v48_v5 }
   0x4   :  { %vm12_vm3 = vcmp.lt.s32.totalorder %v9_v2, 64  ;;  %v21_v7 = vsel %vm20_vm2, 1, %v85_v6  ;;  %v24_v8 = vsub.s32 0, %v23_v3  ;;  %v28_v9 = vsub.s32 1, %v23_v3 }
   0x5   :  { %v32_v10 = vsub.s32 2, %v23_v3  ;;  %vm17_vm4 = vmxor %vm12_vm3, %vm84_vm1  ;;  %v52_v15 = vsub.s32 %v49_v11, %v23_v3 }
   0x6   :  { %v25_v12 = vrot.slane %v21_v7, %v24_v8  ;;  %v29_v13 = vrot.slane %v21_v7, %v28_v9 }
   0x7   :  { %v33_v14 = vrot.slane %v21_v7, %v32_v10 }
   0x8   :  { %vm34_vm5 = vcmp.ne.s32.totalorder %v25_v12, 0  ;;  %vm35_vm6 = vcmp.ne.s32.totalorder %v29_v13, 0 }
   0x9   :  { %vm36_vm7 = vcmp.ne.s32.totalorder %v33_v14, 0  ;;  %vm37_vm8 = vmand %vm17_vm4, %vm34_vm5  ;;  %v41_v17 = vsel %vm35_vm6, 1.0, %v86_v16 }
   0xa   :  { %v40_v18 = vsel %vm37_vm8, 1.0, %v86_v16  ;;  %v42_v19 = vsel %vm36_vm7, 1.0, %v86_v16 }
   0xb   :  { %v46_v20 = vcombine.low %v40_v18, %v41_v17  ;;  %v60_v21 = vrot.slane %v42_v19, %v52_v15 }
   0xd   :  { %v53_v22 = vrot.slane %v46_v20, %v52_v15 }
   0xf   :  { %v61_v23 = vcombine.low %v53_v22, %v60_v21 }
  0x11   :  { %v68_v24 = vrot.slane %v61_v23, %v52_v15 }
  0x13   :  { %74 = vst.msk [vmem:[%s104_s1] sm:$0x7] %vm72_vm9, %v68_v24 }

</bundles_post_ra>
